<compile_context>
chip_gen: v7x
topology: tpu7x:2x2x1
jax: 0.10.0
libtpu: 0.0.40
codegen_flags: <defaults>
</compile_context>

<pallas_src>
import jax
import jax.numpy as jnp
from jax.experimental import pallas as pl
from jax.experimental.pallas import tpu as pltpu

BN_EPS = 1e-5
TILE_M = 256  # rows (2x2 output blocks) per grid step; raise to 512-1024 for big inputs


# ---------------------------------------------------------------------------
# Pallas kernels
# ---------------------------------------------------------------------------
def convT_stats_kernel(p_ref, w_ref, conv_ref, stats_ref):
    """Sub-pixel transposed-conv matmul + per-tile BN partial statistics.

    p_ref     : (TILE_M, K)   bf16 patches (K = 4*C_in)
    w_ref     : (K, C4)       bf16 sub-pixel weight matrix (C4 = 4*C_out)
    conv_ref  : (TILE_M, C4)  f32 pre-BN conv output
    stats_ref : (8, C4)       f32; row 0 = sum, row 1 = sum of squares
    """
    acc = jnp.dot(p_ref[...], w_ref[...], preferred_element_type=jnp.float32)
    conv_ref[...] = acc
    s1 = jnp.sum(acc, axis=0, keepdims=True)
    s2 = jnp.sum(acc * acc, axis=0, keepdims=True)
    pad = jnp.zeros((6, acc.shape[1]), jnp.float32)
    stats_ref[...] = jnp.concatenate([s1, s2, pad], axis=0)


def bn_relu_kernel(conv_ref, scale_ref, shift_ref, out_ref):
    """Fused BatchNorm (pre-folded scale/shift) + ReLU: single FMA sweep."""
    y = conv_ref[...] * scale_ref[...] + shift_ref[...]
    out_ref[...] = jnp.maximum(y, 0.0).astype(out_ref.dtype)


def convT_bias_sigmoid_kernel(p_ref, w_ref, b_ref, out_ref):
    """Final layer: sub-pixel matmul + bias + sigmoid (no BN)."""
    acc = jnp.dot(p_ref[...], w_ref[...], preferred_element_type=jnp.float32)
    acc = acc + b_ref[...]
    out_ref[...] = jax.nn.sigmoid(acc).astype(out_ref.dtype)


# ---------------------------------------------------------------------------
# Wrapper glue (pure data movement / tiny per-channel math)
# ---------------------------------------------------------------------------
def _round_up(x, m):
    return (x + m - 1) // m * m


def _grid_dims(m_real, tile_hint):
    # Tile rows must be a multiple of 16 (bf16 sublane packing) unless it
    # covers the whole (padded) array.
    tile_m = min(_round_up(tile_hint, 16), _round_up(m_real, 16))
    m_pad = _round_up(m_real, tile_m)
    return tile_m, m_pad, m_pad // tile_m


def _pad_rows(a, m_pad):
    if a.shape[0] == m_pad:
        return a
    return jnp.pad(a, ((0, m_pad - a.shape[0]), (0, 0)))


def _make_subpixel_patches(x_nhwc):
    """2x2 forward neighbourhood (zero-padded bottom/right) -> (M, 4*C)."""
    n, h, w, c = x_nhwc.shape
    xp = jnp.pad(x_nhwc, ((0, 0), (0, 1), (0, 1), (0, 0)))
    taps = [xp[:, :h, :w, :],            # (dh, dw) = (0, 0)
            xp[:, :h, 1:w + 1, :],       # (0, 1)
            xp[:, 1:h + 1, :w, :],       # (1, 0)
            xp[:, 1:h + 1, 1:w + 1, :]]  # (1, 1)
    patches = jnp.concatenate(taps, axis=-1)           # (N, H, W, 4C)
    return patches.reshape(n * h * w, 4 * c), (n, h, w)


def _build_subpixel_weight(w):
    """PyTorch ConvTranspose2d weight (C_in, C_out, 3, 3) -> (4*C_in, 4*C_out).

    Rows: tap d = 2*dh + dw (input neighbour offset).  Cols: sub-pixel
    s = 2*a + b (output parity), channel-minor.  Derived from
    oh = 2*ih - 1 + kh  =>  kh = a - 2*dh + 1 (and likewise for kw).
    """
    c_in, c_out = w.shape[0], w.shape[1]
    wm = jnp.zeros((4 * c_in, 4 * c_out), jnp.float32)
    contrib = [  # (tap d, sub-pos s, kh, kw)
        (0, 0, 1, 1),
        (0, 1, 1, 2), (1, 1, 1, 0),
        (0, 2, 2, 1), (2, 2, 0, 1),
        (0, 3, 2, 2), (1, 3, 2, 0), (2, 3, 0, 2), (3, 3, 0, 0),
    ]
    for d, s, kh, kw in contrib:
        wm = wm.at[d * c_in:(d + 1) * c_in, s * c_out:(s + 1) * c_out].set(w[:, :, kh, kw])
    return wm


def _subpixel_to_image(y_flat, n, h, w, c_out):
    """(N*H*W, 4*C_out) sub-pixel layout -> (N, 2H, 2W, C_out)."""
    y = y_flat.reshape(n, h, w, 2, 2, c_out)
    y = jnp.transpose(y, (0, 1, 3, 2, 4, 5))
    return y.reshape(n, 2 * h, 2 * w, c_out)


def _compiler_params():
    return pltpu.CompilerParams(dimension_semantics=("parallel",),
                                vmem_limit_bytes=32 * 1024 * 1024)


# ---------------------------------------------------------------------------
# Layers
# ---------------------------------------------------------------------------
def convT_bn_relu_layer(x_nhwc, w, gamma, beta, *, tile_hint=TILE_M):
    c_out = w.shape[1]
    patches, (n, h, wd) = _make_subpixel_patches(x_nhwc)
    m_real, k = patches.shape
    c4 = 4 * c_out
    tile_m, m_pad, grid_m = _grid_dims(m_real, tile_hint)

    patches = _pad_rows(patches, m_pad).astype(jnp.bfloat16)
    w_mat = _build_subpixel_weight(w).astype(jnp.bfloat16)
    # Conv bias intentionally dropped: cancelled exactly by training-mode BN.

    conv, stats = pl.pallas_call(
        convT_stats_kernel,
        out_shape=(jax.ShapeDtypeStruct((m_pad, c4), jnp.float32),
                   jax.ShapeDtypeStruct((grid_m * 8, c4), jnp.float32)),
        grid=(grid_m,),
        in_specs=[pl.BlockSpec((tile_m, k), lambda i: (i, 0)),
                  pl.BlockSpec((k, c4), lambda i: (0, 0))],
        out_specs=(pl.BlockSpec((tile_m, c4), lambda i: (i, 0)),
                   pl.BlockSpec((8, c4), lambda i: (i, 0))),
        compiler_params=_compiler_params(),
    )(patches, w_mat)

    # Tiny O(C_out) epilogue: fold per-tile partials + 4 sub-pixel column
    # groups into one per-channel (scale, shift) pair (one-pass var, >= 0).
    count = jnp.float32(m_real * 4)                     # = N * (2H) * (2W)
    stats = stats.reshape(grid_m, 8, c4)
    col_sum = jnp.sum(stats[:, 0, :], axis=0).reshape(4, c_out)
    col_sq = jnp.sum(stats[:, 1, :], axis=0).reshape(4, c_out)
    mean = jnp.sum(col_sum, axis=0) / count
    var = jnp.maximum(jnp.sum(col_sq, axis=0) / count - mean * mean, 0.0)
    scale_c = gamma * jax.lax.rsqrt(var + BN_EPS)
    shift_c = beta - mean * scale_c
    scale = jnp.tile(scale_c, 4).reshape(1, c4)
    shift = jnp.tile(shift_c, 4).reshape(1, c4)

    act = pl.pallas_call(
        bn_relu_kernel,
        out_shape=jax.ShapeDtypeStruct((m_pad, c4), jnp.bfloat16),
        grid=(grid_m,),
        in_specs=[pl.BlockSpec((tile_m, c4), lambda i: (i, 0)),
                  pl.BlockSpec((1, c4), lambda i: (0, 0)),
                  pl.BlockSpec((1, c4), lambda i: (0, 0))],
        out_specs=pl.BlockSpec((tile_m, c4), lambda i: (i, 0)),
        compiler_params=_compiler_params(),
    )(conv, scale, shift)

    return _subpixel_to_image(act[:m_real], n, h, wd, c_out)


def convT_sigmoid_layer(x_nhwc, w, b, *, tile_hint=TILE_M):
    c_out = w.shape[1]
    patches, (n, h, wd) = _make_subpixel_patches(x_nhwc)
    m_real, k = patches.shape
    c4 = 4 * c_out
    tile_m, m_pad, grid_m = _grid_dims(m_real, tile_hint)

    patches = _pad_rows(patches, m_pad).astype(jnp.bfloat16)
    w_mat = _build_subpixel_weight(w).astype(jnp.bfloat16)
    b4 = jnp.tile(b.astype(jnp.float32), 4).reshape(1, c4)

    out = pl.pallas_call(
        convT_bias_sigmoid_kernel,
        out_shape=jax.ShapeDtypeStruct((m_pad, c4), jnp.float32),
        grid=(grid_m,),
        in_specs=[pl.BlockSpec((tile_m, k), lambda i: (i, 0)),
                  pl.BlockSpec((k, c4), lambda i: (0, 0)),
                  pl.BlockSpec((1, c4), lambda i: (0, 0))],
        out_specs=pl.BlockSpec((tile_m, c4), lambda i: (i, 0)),
        compiler_params=_compiler_params(),
    )(patches, w_mat, b4)

    return _subpixel_to_image(out[:m_real], n, h, wd, c_out)


# ---------------------------------------------------------------------------
# Decoder forward + params
# ---------------------------------------------------------------------------
def decoder_forward(x_nchw, params):
    (w1, _b1, g1, be1), (w2, _b2, g2, be2), (w3, b3) = params
    x = jnp.transpose(x_nchw, (0, 2, 3, 1))            # NCHW -> NHWC
    x = convT_bn_relu_layer(x, w1, g1, be1)
    x = convT_bn_relu_layer(x, w2, g2, be2)
    x = convT_sigmoid_layer(x, w3, b3)
    return jnp.transpose(x, (0, 3, 1, 2)).astype(jnp.float32)  # NHWC -> NCHW


def init_decoder_params(key):
    def convT_w(k, c_in, c_out):
        return jax.random.normal(k, (c_in, c_out, 3, 3), jnp.float32) / jnp.sqrt(9.0 * c_in)

    ks = jax.random.split(key, 10)
    w1 = convT_w(ks[0], 64, 32)
    b1 = 0.1 * jax.random.normal(ks[1], (32,), jnp.float32)
    g1 = 1.0 + 0.1 * jax.random.normal(ks[2], (32,), jnp.float32)
    be1 = 0.1 * jax.random.normal(ks[3], (32,), jnp.float32)
    w2 = convT_w(ks[4], 32, 16)
    b2 = 0.1 * jax.random.normal(ks[5], (16,), jnp.float32)
    g2 = 1.0 + 0.1 * jax.random.normal(ks[6], (16,), jnp.float32)
    be2 = 0.1 * jax.random.normal(ks[7], (16,), jnp.float32)
    w3 = convT_w(ks[8], 16, 1)
    b3 = 0.1 * jax.random.normal(ks[9], (1,), jnp.float32)
    return ((w1, b1, g1, be1), (w2, b2, g2, be2), (w3, b3))


# ---------------------------------------------------------------------------
# Pure-JAX f32 reference (ConvTranspose2d == dilated conv with flipped kernel)
# ---------------------------------------------------------------------------
def _ref_conv_transpose(x_nchw, w, b):
    w_flip = jnp.transpose(jnp.flip(w, axis=(2, 3)), (1, 0, 2, 3))   # (C_out, C_in, 3, 3)
    y = jax.lax.conv_general_dilated(
        x_nchw, w_flip, window_strides=(1, 1), padding=((1, 2), (1, 2)),
        lhs_dilation=(2, 2), dimension_numbers=("NCHW", "OIHW", "NCHW"))
    return y + b.reshape(1, -1, 1, 1)


def _ref_bn_relu(y, gamma, beta):
    mean = y.mean(axis=(0, 2, 3), keepdims=True)
    var = y.var(axis=(0, 2, 3), keepdims=True)         # biased (PyTorch train forward)
    yn = (y - mean) * jax.lax.rsqrt(var + BN_EPS)
    return jnp.maximum(yn * gamma.reshape(1, -1, 1, 1) + beta.reshape(1, -1, 1, 1), 0.0)


def decoder_reference(x, params):
    (w1, b1, g1, be1), (w2, b2, g2, be2), (w3, b3) = params
    y = _ref_bn_relu(_ref_conv_transpose(x, w1, b1), g1, be1)
    y = _ref_bn_relu(_ref_conv_transpose(y, w2, b2), g2, be2)
    return jax.nn.sigmoid(_ref_conv_transpose(y, w3, b3))


if __name__ == "__main__":
    key = jax.random.PRNGKey(0)
    kx, kp = jax.random.split(key)

    # Decoder latent: (N=2, C=64, 8, 8) -> output (2, 1, 64, 64).
    x = jax.random.normal(kx, (2, 64, 8, 8), jnp.float32)
    params = init_decoder_params(kp)

    y = jax.block_until_ready(jax.jit(decoder_forward)(x, params))
    assert y.shape == (2, 1, 64, 64), y.shape
    assert bool(jnp.isfinite(y).all())
    assert bool(jnp.all((y >= 0.0) & (y <= 1.0)))

    y_ref = jax.block_until_ready(jax.jit(decoder_reference)(x, params))
    max_err = float(jnp.max(jnp.abs(y - y_ref)))
    assert max_err < 5e-2, max_err   # bf16 MXU operands, f32 accumulation

    print("KERNEL_OK")
</pallas_src>

<mosaic_0001>
module attributes {stable_mosaic.version = 11 : i64} {
  func.func @convT_stats_kernel(%arg0: i32, %arg1: memref<128x256xbf16, #tpu.memory_space<vmem>>, %arg2: memref<256x128xbf16, #tpu.memory_space<vmem>>, %arg3: memref<128x128xf32, #tpu.memory_space<vmem>>, %arg4: memref<8x128xf32, #tpu.memory_space<vmem>>) attributes {dimension_semantics = [#tpu.dimension_semantics<parallel>], iteration_bounds = array<i64: 1>, scalar_prefetch = 0 : i64, scratch_operands = 0 : i64, tpu.core_type = #tpu.core_type<tc>, window_params = [{transform_indices = @transform_0, window_bounds = array<i64: 128, 256>}, {pipeline_mode = #tpu.pipeline_mode<synchronous>, transform_indices = @transform_1, window_bounds = array<i64: 256, 128>}, {transform_indices = @transform_2, window_bounds = array<i64: 128, 128>}, {transform_indices = @transform_3, window_bounds = array<i64: 8, 128>}]} {
    %c0 = arith.constant 0 : index
    %c0_0 = arith.constant 0 : index
    %0 = vector.load %arg1[%c0, %c0_0] : memref<128x256xbf16, #tpu.memory_space<vmem>>, vector<128x256xbf16>
    %c0_1 = arith.constant 0 : index
    %c0_2 = arith.constant 0 : index
    %1 = vector.load %arg2[%c0_1, %c0_2] : memref<256x128xbf16, #tpu.memory_space<vmem>>, vector<256x128xbf16>
    %cst = arith.constant dense<0.000000e+00> : vector<128x128xf32>
    %2 = tpu.matmul %0, %1, %cst {dimension_numbers = #tpu.dot_dimension_numbers<[1], [0], [0], [1], [0, 0, 1, 1], [], []>} : vector<128x256xbf16>, vector<256x128xbf16>, vector<128x128xf32> -> vector<128x128xf32>
    %c0_3 = arith.constant 0 : index
    %c0_4 = arith.constant 0 : index
    %3 = vector.load %arg3[%c0_3, %c0_4] : memref<128x128xf32, #tpu.memory_space<vmem>>, vector<128x128xf32>
    tpu.vector_store %arg3[%c0_3, %c0_4], %2 {strides = array<i32>} : memref<128x128xf32, #tpu.memory_space<vmem>>, vector<128x128xf32>,
    %cst_5 = arith.constant dense<0.000000e+00> : vector<128xf32>
    %4 = vector.multi_reduction <add>, %2, %cst_5 [0] : vector<128x128xf32> to vector<128xf32>
    %5 = vector.shape_cast %4 : vector<128xf32> to vector<1x128xf32>
    %6 = arith.mulf %2, %2 : vector<128x128xf32>
    %cst_6 = arith.constant dense<0.000000e+00> : vector<128xf32>
    %7 = vector.multi_reduction <add>, %6, %cst_6 [0] : vector<128x128xf32> to vector<128xf32>
    %8 = vector.shape_cast %7 : vector<128xf32> to vector<1x128xf32>
    %cst_7 = arith.constant 0.000000e+00 : f32
    %9 = vector.broadcast %cst_7 : f32 to vector<6x128xf32>
    %10 = tpu.concatenate %5, %8, %9 in 0 : vector<1x128xf32>, vector<1x128xf32>, vector<6x128xf32> -> vector<8x128xf32>
    %c0_8 = arith.constant 0 : index
    %c0_9 = arith.constant 0 : index
    %11 = vector.load %arg4[%c0_8, %c0_9] : memref<8x128xf32, #tpu.memory_space<vmem>>, vector<8x128xf32>
    tpu.vector_store %arg4[%c0_8, %c0_9], %10 {strides = array<i32>} : memref<8x128xf32, #tpu.memory_space<vmem>>, vector<8x128xf32>,
    return
  }
  func.func @transform_0(%arg0: i32) -> (i32, i32) {
    %c0_i32 = arith.constant 0 : i32
    %c0_i32_0 = arith.constant 0 : i32
    return %arg0, %c0_i32 : i32, i32
  }
  func.func @transform_1(%arg0: i32) -> (i32, i32) {
    %c0_i32 = arith.constant 0 : i32
    %c0_i32_0 = arith.constant 0 : i32
    %c0_i32_1 = arith.constant 0 : i32
    return %c0_i32, %c0_i32_0 : i32, i32
  }
  func.func @transform_2(%arg0: i32) -> (i32, i32) {
    %c0_i32 = arith.constant 0 : i32
    %c0_i32_0 = arith.constant 0 : i32
    return %arg0, %c0_i32 : i32, i32
  }
  func.func @transform_3(%arg0: i32) -> (i32, i32) {
    %c0_i32 = arith.constant 0 : i32
    %c0_i32_0 = arith.constant 0 : i32
    return %arg0, %c0_i32 : i32, i32
  }
}

module attributes {stable_mosaic.version = 11 : i64} {
  func.func @bn_relu_kernel(%arg0: i32, %arg1: memref<128x128xf32, #tpu.memory_space<vmem>>, %arg2: memref<1x128xf32, #tpu.memory_space<vmem>>, %arg3: memref<1x128xf32, #tpu.memory_space<vmem>>, %arg4: memref<128x128xbf16, #tpu.memory_space<vmem>>) attributes {dimension_semantics = [#tpu.dimension_semantics<parallel>], iteration_bounds = array<i64: 1>, scalar_prefetch = 0 : i64, scratch_operands = 0 : i64, tpu.core_type = #tpu.core_type<tc>, window_params = [{transform_indices = @transform_0, window_bounds = array<i64: 128, 128>}, {pipeline_mode = #tpu.pipeline_mode<synchronous>, transform_indices = @transform_1, window_bounds = array<i64: 1, 128>}, {pipeline_mode = #tpu.pipeline_mode<synchronous>, transform_indices = @transform_2, window_bounds = array<i64: 1, 128>}, {transform_indices = @transform_3, window_bounds = array<i64: 128, 128>}]} {
    %c0 = arith.constant 0 : index
    %c0_0 = arith.constant 0 : index
    %0 = vector.load %arg1[%c0, %c0_0] : memref<128x128xf32, #tpu.memory_space<vmem>>, vector<128x128xf32>
    %c0_1 = arith.constant 0 : index
    %c0_2 = arith.constant 0 : index
    %1 = vector.load %arg2[%c0_1, %c0_2] : memref<1x128xf32, #tpu.memory_space<vmem>>, vector<1x128xf32>
    %2 = vector.broadcast %1 : vector<1x128xf32> to vector<128x128xf32>
    %3 = arith.mulf %0, %2 : vector<128x128xf32>
    %c0_3 = arith.constant 0 : index
    %c0_4 = arith.constant 0 : index
    %4 = vector.load %arg3[%c0_3, %c0_4] : memref<1x128xf32, #tpu.memory_space<vmem>>, vector<1x128xf32>
    %5 = vector.broadcast %4 : vector<1x128xf32> to vector<128x128xf32>
    %6 = arith.addf %3, %5 : vector<128x128xf32>
    %cst = arith.constant 0.000000e+00 : f32
    %7 = vector.broadcast %cst : f32 to vector<128x128xf32>
    %8 = arith.maximumf %6, %7 : vector<128x128xf32>
    %9 = arith.truncf %8 : vector<128x128xf32> to vector<128x128xbf16>
    %c0_5 = arith.constant 0 : index
    %c0_6 = arith.constant 0 : index
    %10 = vector.load %arg4[%c0_5, %c0_6] : memref<128x128xbf16, #tpu.memory_space<vmem>>, vector<128x128xbf16>
    tpu.vector_store %arg4[%c0_5, %c0_6], %9 {strides = array<i32>} : memref<128x128xbf16, #tpu.memory_space<vmem>>, vector<128x128xbf16>,
    return
  }
  func.func @transform_0(%arg0: i32) -> (i32, i32) {
    %c0_i32 = arith.constant 0 : i32
    %c0_i32_0 = arith.constant 0 : i32
    return %arg0, %c0_i32 : i32, i32
  }
  func.func @transform_1(%arg0: i32) -> (i32, i32) {
    %c0_i32 = arith.constant 0 : i32
    %c0_i32_0 = arith.constant 0 : i32
    %c0_i32_1 = arith.constant 0 : i32
    return %c0_i32, %c0_i32_0 : i32, i32
  }
  func.func @transform_2(%arg0: i32) -> (i32, i32) {
    %c0_i32 = arith.constant 0 : i32
    %c0_i32_0 = arith.constant 0 : i32
    %c0_i32_1 = arith.constant 0 : i32
    return %c0_i32, %c0_i32_0 : i32, i32
  }
  func.func @transform_3(%arg0: i32) -> (i32, i32) {
    %c0_i32 = arith.constant 0 : i32
    %c0_i32_0 = arith.constant 0 : i32
    return %arg0, %c0_i32 : i32, i32
  }
}

module attributes {stable_mosaic.version = 11 : i64} {
  func.func @convT_stats_kernel(%arg0: i32, %arg1: memref<256x128xbf16, #tpu.memory_space<vmem>>, %arg2: memref<128x64xbf16, #tpu.memory_space<vmem>>, %arg3: memref<256x64xf32, #tpu.memory_space<vmem>>, %arg4: memref<8x64xf32, #tpu.memory_space<vmem>>) attributes {dimension_semantics = [#tpu.dimension_semantics<parallel>], iteration_bounds = array<i64: 2>, scalar_prefetch = 0 : i64, scratch_operands = 0 : i64, tpu.core_type = #tpu.core_type<tc>, window_params = [{transform_indices = @transform_0, window_bounds = array<i64: 256, 128>}, {pipeline_mode = #tpu.pipeline_mode<synchronous>, transform_indices = @transform_1, window_bounds = array<i64: 128, 64>}, {transform_indices = @transform_2, window_bounds = array<i64: 256, 64>}, {transform_indices = @transform_3, window_bounds = array<i64: 8, 64>}]} {
    %c0 = arith.constant 0 : index
    %c0_0 = arith.constant 0 : index
    %0 = vector.load %arg1[%c0, %c0_0] : memref<256x128xbf16, #tpu.memory_space<vmem>>, vector<256x128xbf16>
    %c0_1 = arith.constant 0 : index
    %c0_2 = arith.constant 0 : index
    %1 = vector.load %arg2[%c0_1, %c0_2] : memref<128x64xbf16, #tpu.memory_space<vmem>>, vector<128x64xbf16>
    %cst = arith.constant dense<0.000000e+00> : vector<256x64xf32>
    %2 = tpu.matmul %0, %1, %cst {dimension_numbers = #tpu.dot_dimension_numbers<[1], [0], [0], [1], [0, 0, 1, 1], [], []>} : vector<256x128xbf16>, vector<128x64xbf16>, vector<256x64xf32> -> vector<256x64xf32>
    %c0_3 = arith.constant 0 : index
    %c0_4 = arith.constant 0 : index
    %3 = vector.load %arg3[%c0_3, %c0_4] : memref<256x64xf32, #tpu.memory_space<vmem>>, vector<256x64xf32>
    tpu.vector_store %arg3[%c0_3, %c0_4], %2 {strides = array<i32>} : memref<256x64xf32, #tpu.memory_space<vmem>>, vector<256x64xf32>,
    %cst_5 = arith.constant dense<0.000000e+00> : vector<64xf32>
    %4 = vector.multi_reduction <add>, %2, %cst_5 [0] : vector<256x64xf32> to vector<64xf32>
    %5 = vector.shape_cast %4 : vector<64xf32> to vector<1x64xf32>
    %6 = arith.mulf %2, %2 : vector<256x64xf32>
    %cst_6 = arith.constant dense<0.000000e+00> : vector<64xf32>
    %7 = vector.multi_reduction <add>, %6, %cst_6 [0] : vector<256x64xf32> to vector<64xf32>
    %8 = vector.shape_cast %7 : vector<64xf32> to vector<1x64xf32>
    %cst_7 = arith.constant 0.000000e+00 : f32
    %9 = vector.broadcast %cst_7 : f32 to vector<6x64xf32>
    %10 = tpu.concatenate %5, %8, %9 in 0 : vector<1x64xf32>, vector<1x64xf32>, vector<6x64xf32> -> vector<8x64xf32>
    %c0_8 = arith.constant 0 : index
    %c0_9 = arith.constant 0 : index
    %11 = vector.load %arg4[%c0_8, %c0_9] : memref<8x64xf32, #tpu.memory_space<vmem>>, vector<8x64xf32>
    tpu.vector_store %arg4[%c0_8, %c0_9], %10 {strides = array<i32>} : memref<8x64xf32, #tpu.memory_space<vmem>>, vector<8x64xf32>,
    return
  }
  func.func @transform_0(%arg0: i32) -> (i32, i32) {
    %c0_i32 = arith.constant 0 : i32
    %c0_i32_0 = arith.constant 0 : i32
    return %arg0, %c0_i32 : i32, i32
  }
  func.func @transform_1(%arg0: i32) -> (i32, i32) {
    %c0_i32 = arith.constant 0 : i32
    %c0_i32_0 = arith.constant 0 : i32
    %c0_i32_1 = arith.constant 0 : i32
    return %c0_i32, %c0_i32_0 : i32, i32
  }
  func.func @transform_2(%arg0: i32) -> (i32, i32) {
    %c0_i32 = arith.constant 0 : i32
    %c0_i32_0 = arith.constant 0 : i32
    return %arg0, %c0_i32 : i32, i32
  }
  func.func @transform_3(%arg0: i32) -> (i32, i32) {
    %c0_i32 = arith.constant 0 : i32
    %c0_i32_0 = arith.constant 0 : i32
    return %arg0, %c0_i32 : i32, i32
  }
}

module attributes {stable_mosaic.version = 11 : i64} {
  func.func @bn_relu_kernel(%arg0: i32, %arg1: memref<256x64xf32, #tpu.memory_space<vmem>>, %arg2: memref<1x64xf32, #tpu.memory_space<vmem>>, %arg3: memref<1x64xf32, #tpu.memory_space<vmem>>, %arg4: memref<256x64xbf16, #tpu.memory_space<vmem>>) attributes {dimension_semantics = [#tpu.dimension_semantics<parallel>], iteration_bounds = array<i64: 2>, scalar_prefetch = 0 : i64, scratch_operands = 0 : i64, tpu.core_type = #tpu.core_type<tc>, window_params = [{transform_indices = @transform_0, window_bounds = array<i64: 256, 64>}, {pipeline_mode = #tpu.pipeline_mode<synchronous>, transform_indices = @transform_1, window_bounds = array<i64: 1, 64>}, {pipeline_mode = #tpu.pipeline_mode<synchronous>, transform_indices = @transform_2, window_bounds = array<i64: 1, 64>}, {transform_indices = @transform_3, window_bounds = array<i64: 256, 64>}]} {
    %c0 = arith.constant 0 : index
    %c0_0 = arith.constant 0 : index
    %0 = vector.load %arg1[%c0, %c0_0] : memref<256x64xf32, #tpu.memory_space<vmem>>, vector<256x64xf32>
    %c0_1 = arith.constant 0 : index
    %c0_2 = arith.constant 0 : index
    %1 = vector.load %arg2[%c0_1, %c0_2] : memref<1x64xf32, #tpu.memory_space<vmem>>, vector<1x64xf32>
    %2 = vector.broadcast %1 : vector<1x64xf32> to vector<256x64xf32>
    %3 = arith.mulf %0, %2 : vector<256x64xf32>
    %c0_3 = arith.constant 0 : index
    %c0_4 = arith.constant 0 : index
    %4 = vector.load %arg3[%c0_3, %c0_4] : memref<1x64xf32, #tpu.memory_space<vmem>>, vector<1x64xf32>
    %5 = vector.broadcast %4 : vector<1x64xf32> to vector<256x64xf32>
    %6 = arith.addf %3, %5 : vector<256x64xf32>
    %cst = arith.constant 0.000000e+00 : f32
    %7 = vector.broadcast %cst : f32 to vector<256x64xf32>
    %8 = arith.maximumf %6, %7 : vector<256x64xf32>
    %9 = arith.truncf %8 : vector<256x64xf32> to vector<256x64xbf16>
    %c0_5 = arith.constant 0 : index
    %c0_6 = arith.constant 0 : index
    %10 = vector.load %arg4[%c0_5, %c0_6] : memref<256x64xbf16, #tpu.memory_space<vmem>>, vector<256x64xbf16>
    tpu.vector_store %arg4[%c0_5, %c0_6], %9 {strides = array<i32>} : memref<256x64xbf16, #tpu.memory_space<vmem>>, vector<256x64xbf16>,
    return
  }
  func.func @transform_0(%arg0: i32) -> (i32, i32) {
    %c0_i32 = arith.constant 0 : i32
    %c0_i32_0 = arith.constant 0 : i32
    return %arg0, %c0_i32 : i32, i32
  }
  func.func @transform_1(%arg0: i32) -> (i32, i32) {
    %c0_i32 = arith.constant 0 : i32
    %c0_i32_0 = arith.constant 0 : i32
    %c0_i32_1 = arith.constant 0 : i32
    return %c0_i32, %c0_i32_0 : i32, i32
  }
  func.func @transform_2(%arg0: i32) -> (i32, i32) {
    %c0_i32 = arith.constant 0 : i32
    %c0_i32_0 = arith.constant 0 : i32
    %c0_i32_1 = arith.constant 0 : i32
    return %c0_i32, %c0_i32_0 : i32, i32
  }
  func.func @transform_3(%arg0: i32) -> (i32, i32) {
    %c0_i32 = arith.constant 0 : i32
    %c0_i32_0 = arith.constant 0 : i32
    return %arg0, %c0_i32 : i32, i32
  }
}

module attributes {stable_mosaic.version = 11 : i64} {
  func.func @convT_bias_sigmoid_kernel(%arg0: i32, %arg1: memref<256x64xbf16, #tpu.memory_space<vmem>>, %arg2: memref<64x4xbf16, #tpu.memory_space<vmem>>, %arg3: memref<1x4xf32, #tpu.memory_space<vmem>>, %arg4: memref<256x4xf32, #tpu.memory_space<vmem>>) attributes {dimension_semantics = [#tpu.dimension_semantics<parallel>], iteration_bounds = array<i64: 8>, scalar_prefetch = 0 : i64, scratch_operands = 0 : i64, tpu.core_type = #tpu.core_type<tc>, window_params = [{transform_indices = @transform_0, window_bounds = array<i64: 256, 64>}, {pipeline_mode = #tpu.pipeline_mode<synchronous>, transform_indices = @transform_1, window_bounds = array<i64: 64, 4>}, {pipeline_mode = #tpu.pipeline_mode<synchronous>, transform_indices = @transform_2, window_bounds = array<i64: 1, 4>}, {transform_indices = @transform_3, window_bounds = array<i64: 256, 4>}]} {
    %c0 = arith.constant 0 : index
    %c0_0 = arith.constant 0 : index
    %0 = vector.load %arg1[%c0, %c0_0] : memref<256x64xbf16, #tpu.memory_space<vmem>>, vector<256x64xbf16>
    %c0_1 = arith.constant 0 : index
    %c0_2 = arith.constant 0 : index
    %1 = vector.load %arg2[%c0_1, %c0_2] : memref<64x4xbf16, #tpu.memory_space<vmem>>, vector<64x4xbf16>
    %cst = arith.constant dense<0.000000e+00> : vector<256x4xf32>
    %2 = tpu.matmul %0, %1, %cst {dimension_numbers = #tpu.dot_dimension_numbers<[1], [0], [0], [1], [0, 0, 1, 1], [], []>} : vector<256x64xbf16>, vector<64x4xbf16>, vector<256x4xf32> -> vector<256x4xf32>
    %c0_3 = arith.constant 0 : index
    %c0_4 = arith.constant 0 : index
    %3 = vector.load %arg3[%c0_3, %c0_4] : memref<1x4xf32, #tpu.memory_space<vmem>>, vector<1x4xf32>
    %4 = vector.broadcast %3 : vector<1x4xf32> to vector<256x4xf32>
    %5 = arith.addf %2, %4 : vector<256x4xf32>
    %6 = arith.negf %5 : vector<256x4xf32>
    %7 = math.exp %6 : vector<256x4xf32>
    %cst_5 = arith.constant 1.000000e+00 : f32
    %8 = vector.broadcast %cst_5 : f32 to vector<256x4xf32>
    %9 = arith.addf %8, %7 : vector<256x4xf32>
    %10 = arith.divf %8, %9 : vector<256x4xf32>
    %c0_6 = arith.constant 0 : index
    %c0_7 = arith.constant 0 : index
    %11 = vector.load %arg4[%c0_6, %c0_7] : memref<256x4xf32, #tpu.memory_space<vmem>>, vector<256x4xf32>
    tpu.vector_store %arg4[%c0_6, %c0_7], %10 {strides = array<i32>} : memref<256x4xf32, #tpu.memory_space<vmem>>, vector<256x4xf32>,
    return
  }
  func.func @transform_0(%arg0: i32) -> (i32, i32) {
    %c0_i32 = arith.constant 0 : i32
    %c0_i32_0 = arith.constant 0 : i32
    return %arg0, %c0_i32 : i32, i32
  }
  func.func @transform_1(%arg0: i32) -> (i32, i32) {
    %c0_i32 = arith.constant 0 : i32
    %c0_i32_0 = arith.constant 0 : i32
    %c0_i32_1 = arith.constant 0 : i32
    return %c0_i32, %c0_i32_0 : i32, i32
  }
  func.func @transform_2(%arg0: i32) -> (i32, i32) {
    %c0_i32 = arith.constant 0 : i32
    %c0_i32_0 = arith.constant 0 : i32
    %c0_i32_1 = arith.constant 0 : i32
    return %c0_i32, %c0_i32_0 : i32, i32
  }
  func.func @transform_3(%arg0: i32) -> (i32, i32) {
    %c0_i32 = arith.constant 0 : i32
    %c0_i32_0 = arith.constant 0 : i32
    return %arg0, %c0_i32 : i32, i32
  }
}

</mosaic_0001>

<bundles_post_ra>
// kernel: tile.28
= control target key start
LH: loop header
LB: loop body
LE: loop exit
PB: predicated region body
PF: predicated region fallthrough
CT: control target
= control target key end

     0   :  { %s22_s0 = inlined_call_operand.vmem [shape: f32[32], index: 0, kind: input, shape index: {}]   ;;  %s23_s1 = inlined_call_operand.vmem [shape: f32[4,32], index: 1, kind: output, shape index: {}]  }
   0x1   :  { %v4_v0 = vld [vmem:[%s22_s0] ss:$0 sm:$0xff] }
   0x2   :  { %5 = vst [vmem:[%s23_s1] sm:$0xf] %v4_v0 }

// kernel: tile.29
= control target key start
LH: loop header
LB: loop body
LE: loop exit
PB: predicated region body
PF: predicated region fallthrough
CT: control target
= control target key end

     0   :  { %vm7_vm0 = vcmask 261120   ;;  %s37_s8 = smov 32   ;;  %s38_s9 = smov 64   ;;  %vm13_vm1 = vcmask 1048320   ;;  %vm19_vm2 = vcmask 785920   ;;  %vm25_vm3 = vcmask 523520   ;;  %s55_s0 = inlined_call_operand.vmem [shape: f32[4,32], index: 0, kind: input, shape index: {}]   ;;  %s56_s1 = inlined_call_operand.vmem [shape: f32[1,128], index: 1, kind: output, shape index: {}]  }
   0x1   :  { %v4_v0 = vld [vmem:[%s55_s0] sm:$0xf]  ;;  %s36_s0 = smov 96  }
   0x2   :  { %5 = vst [vmem:[#allocation1] sm:$0xf] %v4_v0 }
   0x9   :  { %v10_v1 = vld [vmem:[#allocation1 + $0x3] sm:$0x1]   ;;  %v22_v2 = vld [vmem:[#allocation1 + $0x1] sm:$0x1]   ;;  %v6_v3 = vld [vmem:[#allocation1] sm:$0x1]  }
   0xa   :  { %11 = vrot.lane.b32.xlu0 %v10_v1, %s36_s0  ;;  %23 = vrot.lane.b32.xlu1 %v22_v2, %s37_s8  ;;  %v16_v4 = vld [vmem:[#allocation1 + $0x2] sm:$0x1]   ;;  %8 = vst.msk [vmem:[#allocation0] sm:$0x1] %vm7_vm0, %v6_v3  }
   0xe   :  { %17 = vrot.lane.b32.xlu0 %v16_v4, %s38_s9 }
  0x7c   :  { %v12_v5 = vpop.permute.xlu0 %11   ;;  %v24_v6 = vpop.permute.xlu1 %23  }
  0x7d   :  { %14 = vst.msk [vmem:[#allocation0] sm:$0x1] %vm13_vm1, %v12_v5  }
  0x80   :  { %v18_v7 = vpop.permute.xlu0 %17  }
  0x81   :  { %20 = vst.msk [vmem:[#allocation0] sm:$0x1] %vm19_vm2, %v18_v7  }
  0x82   :  { %26 = vst.msk [vmem:[#allocation0] sm:$0x1] %vm25_vm3, %v24_v6  }
  0x89   :  { %v30_v8 = vld [vmem:[#allocation0] sm:$0x1] }
  0x8a   :  { %32 = vst [vmem:[%s56_s1] sm:$0x1] %v30_v8 }

// kernel: decoder_forward.5
= control target key start
LH: loop header
LB: loop body
LE: loop exit
PB: predicated region body
PF: predicated region fallthrough
CT: control target
= control target key end

     0   :  { %vm409_vm0 = vcmask 1040384   ;;  %vm411_vm1 = vcmask 1041408   ;;  %s759_s1 = inlined_call_operand.vmem [shape: bf16[256,128], index: 1, kind: input, shape index: {}]   ;;  %s760_s0 = inlined_call_operand.vmem [shape: bf16[128,256], index: 0, kind: input, shape index: {}]   ;;  %s761_s2 = inlined_call_operand.vmem [shape: f32[128,128], index: 2, kind: output, shape index: {0}]   ;;  %s762_s3 = inlined_call_operand.vmem [shape: f32[8,128], index: 3, kind: output, shape index: {1}]  }
   0x1   :  { %v534_v0 = vld [vmem:[%s759_s1 + $0x40] sm:$0xff]   ;;  %v536_v2 = vld [vmem:[%s759_s1 + $0x48] sm:$0xff]   ;;  %v538_v4 = vld [vmem:[%s759_s1 + $0x50] sm:$0xff]  }
   0x2   :  { %v535_v1 = vld [vmem:[%s759_s1] sm:$0xff]   ;;  %454 = vmatprep.subr.bf16.mxu0 %v534_v0  ;;  %518 = vmatprep.subr.bf16.mxu1 %v534_v0  ;;  %v537_v3 = vld [vmem:[%s759_s1 + $0x8] sm:$0xff]   ;;  %v539_v5 = vld [vmem:[%s759_s1 + $0x10] sm:$0xff]  }
   0x3   :  { %455 = vmatpush3.bf16.msra.mxu0 %v535_v1  ;;  %526 = vmatpush3.bf16.msra.mxu1 %v535_v1  ;;  %v540_v6 = vld [vmem:[%s759_s1 + $0x58] sm:$0xff]   ;;  %v542_v8 = vld [vmem:[%s759_s1 + $0x60] sm:$0xff]   ;;  %v544_v10 = vld [vmem:[%s759_s1 + $0x68] sm:$0xff]  }
   0x4   :  { %456 = vmatprep.subr.bf16.mxu0 %v536_v2  ;;  %519 = vmatprep.subr.bf16.mxu1 %v536_v2  ;;  %v541_v7 = vld [vmem:[%s759_s1 + $0x18] sm:$0xff]   ;;  %v543_v9 = vld [vmem:[%s759_s1 + $0x20] sm:$0xff]   ;;  %v545_v12 = vld [vmem:[%s759_s1 + $0x28] sm:$0xff]  }
   0x5   :  { %v552_v11 = vld [vmem:[%s760_s0 + $0x4] ss:$8 sps:$4 sm:$0xff]   ;;  %v546_v14 = vld [vmem:[%s759_s1 + $0x70] sm:$0xff]   ;;  %v548_v16 = vld [vmem:[%s759_s1 + $0x78] sm:$0xff]  }
   0x6   :  { %v558_v13 = vld [vmem:[%s760_s0 + $0x44] ss:$8 sps:$4 sm:$0xff]   ;;  %270 = vmatprep.mubr.bf16.mxu0 %v552_v11  ;;  %v547_v15 = vld [vmem:[%s759_s1 + $0x30] sm:$0xff]   ;;  %v549_v17 = vld [vmem:[%s759_s1 + $0x38] sm:$0xff]  }
   0x7   :  { %457 = vmatpush3.bf16.msra.mxu0 %v537_v3  ;;  %527 = vmatpush3.bf16.msra.mxu1 %v537_v3  ;;  %v550_v18 = vld [vmem:[%s760_s0] ss:$8 sps:$4 sm:$0xff]   ;;  %v553_v20 = vld [vmem:[%s760_s0 + $0x14] ss:$8 sps:$4 sm:$0xff]   ;;  %v555_v22 = vld [vmem:[%s760_s0 + $0x10] ss:$8 sps:$4 sm:$0xff]  }
   0x8   :  { %458 = vmatprep.subr.bf16.mxu0 %v538_v4  ;;  %520 = vmatprep.subr.bf16.mxu1 %v538_v4  ;;  %v556_v19 = vld [vmem:[%s760_s0 + $0x40] ss:$8 sps:$4 sm:$0xff]   ;;  %v562_v21 = vld [vmem:[%s760_s0 + $0x54] ss:$8 sps:$4 sm:$0xff]   ;;  %v564_v23 = vld [vmem:[%s760_s0 + $0x50] ss:$8 sps:$4 sm:$0xff]  }
   0x9   :  { %302 = vmatprep.mubr.bf16.mxu1 %v558_v13  ;;  %v559_v24 = vld [vmem:[%s760_s0 + $0x24] ss:$8 sps:$4 sm:$0xff]   ;;  %v561_v26 = vld [vmem:[%s760_s0 + $0x20] ss:$8 sps:$4 sm:$0xff]   ;;  %v565_v28 = vld [vmem:[%s760_s0 + $0x34] ss:$8 sps:$4 sm:$0xff]  }
   0xa   :  { %v568_v25 = vld [vmem:[%s760_s0 + $0x64] ss:$8 sps:$4 sm:$0xff]   ;;  %v570_v27 = vld [vmem:[%s760_s0 + $0x60] ss:$8 sps:$4 sm:$0xff]   ;;  %v571_v29 = vld [vmem:[%s760_s0 + $0x74] ss:$8 sps:$4 sm:$0xff]  }
   0xb   :  { %459 = vmatpush3.bf16.msra.mxu0 %v539_v5  ;;  %528 = vmatpush3.bf16.msra.mxu1 %v539_v5  ;;  %v567_v30 = vld [vmem:[%s760_s0 + $0x30] ss:$8 sps:$4 sm:$0xff]  }
   0xc   :  { %460 = vmatprep.subr.bf16.mxu0 %v540_v6  ;;  %521 = vmatprep.subr.bf16.mxu1 %v540_v6  ;;  %v573_v31 = vld [vmem:[%s760_s0 + $0x70] ss:$8 sps:$4 sm:$0xff]  }
   0xf   :  { %461 = vmatpush3.bf16.msra.mxu0 %v541_v7  ;;  %529 = vmatpush3.bf16.msra.mxu1 %v541_v7 }
  0x10   :  { %462 = vmatprep.subr.bf16.mxu0 %v542_v8  ;;  %522 = vmatprep.subr.bf16.mxu1 %v542_v8 }
  0x13   :  { %463 = vmatpush3.bf16.msra.mxu0 %v543_v9  ;;  %530 = vmatpush3.bf16.msra.mxu1 %v543_v9 }
  0x14   :  { %464 = vmatprep.subr.bf16.mxu0 %v544_v10  ;;  %523 = vmatprep.subr.bf16.mxu1 %v544_v10 }
  0x17   :  { %465 = vmatpush3.bf16.msra.mxu0 %v545_v12  ;;  %531 = vmatpush3.bf16.msra.mxu1 %v545_v12 }
  0x18   :  { %466 = vmatprep.subr.bf16.mxu0 %v546_v14  ;;  %524 = vmatprep.subr.bf16.mxu1 %v546_v14 }
  0x1b   :  { %467 = vmatpush3.bf16.msra.mxu0 %v547_v15  ;;  %532 = vmatpush3.bf16.msra.mxu1 %v547_v15 }
  0x1c   :  { %468 = vmatprep.subr.bf16.mxu0 %v548_v16  ;;  %525 = vmatprep.subr.bf16.mxu1 %v548_v16 }
  0x1f   :  { %469 = vmatpush3.bf16.msra.mxu0 %v549_v17  ;;  %533 = vmatpush3.bf16.msra.mxu1 %v549_v17 }
  0x22   :  { %271 = vmatmul.mubr.bf16.vlgmr.msra.gmra.mrb[0].mxu0 %v550_v18  ;;  %303 = vmatmul.mubr.bf16.vlgmr.msra.gmra.mrb[0].mxu1 %v556_v19 }
  0x23   :  { %278 = vmatprep.mubr.bf16.mxu0 %v553_v20  ;;  %310 = vmatprep.mubr.bf16.mxu1 %v562_v21 }
  0x2a   :  { %279 = vmatmul.mubr.bf16.gmra.mrb[4].mxu0 %v555_v22  ;;  %311 = vmatmul.mubr.bf16.gmra.mrb[4].mxu1 %v564_v23 }
  0x2b   :  { %286 = vmatprep.mubr.bf16.mxu0 %v559_v24  ;;  %318 = vmatprep.mubr.bf16.mxu1 %v568_v25 }
  0x32   :  { %287 = vmatmul.mubr.bf16.gmra.mrb[8].mxu0 %v561_v26  ;;  %319 = vmatmul.mubr.bf16.gmra.mrb[8].mxu1 %v570_v27 }
  0x33   :  { %294 = vmatprep.mubr.bf16.mxu0 %v565_v28  ;;  %326 = vmatprep.mubr.bf16.mxu1 %v571_v29 }
  0x3a   :  { %295 = vmatmul.mubr.bf16.gmra.mrb[12].mxu0 %v567_v30  ;;  %327 = vmatmul.mubr.bf16.gmra.mrb[12].mxu1 %v573_v31 }
  0xf5   :  { %v470_v32 = vpop.f32.mrb[0].mxu0  ;;  %v494_v33 = vpop.f32.mrb[0].mxu1 }
  0xf6   :  { %v471_v34 = vpop.f32.mrb[1].mxu0  ;;  %v495_v35 = vpop.f32.mrb[1].mxu1 }
  0xf7   :  { %v472_v36 = vadd.f32 %v471_v34, %v470_v32  ;;  %v473_v37 = vpop.f32.mrb[2].mxu0  ;;  %v690_v38 = vadd.f32 %v495_v35, %v494_v33  ;;  %v497_v39 = vpop.f32.mrb[2].mxu1 }
  0xf8   :  { %v474_v40 = vpop.f32.mrb[3].mxu0  ;;  %v498_v41 = vpop.f32.mrb[3].mxu1 }
  0xf9   :  { %335 = vst [vmem:[%s761_s2] sm:$0xff] %v472_v36  ;;  %v475_v42 = vadd.f32 %v474_v40, %v473_v37  ;;  %343 = vst [vmem:[%s761_s2 + $0x40] sm:$0xff] %v690_v38  ;;  %v699_v43 = vadd.f32 %v498_v41, %v497_v39  ;;  %v372_v44 = vmul.f32 %v472_v36, %v472_v36 }
  0xfa   :  { %v380_v37 = vmul.f32 %v690_v38, %v690_v38 }
  0xfb   :  { %336 = vst [vmem:[%s761_s2 + $0x8] sm:$0xff] %v475_v42  ;;  %v351_v45 = vadd.f32 %v475_v42, %v472_v36  ;;  %v373_v46 = vmul.f32 %v475_v42, %v475_v42  ;;  %344 = vst [vmem:[%s761_s2 + $0x48] sm:$0xff] %v699_v43  ;;  %v381_v41 = vmul.f32 %v699_v43, %v699_v43 }
  0xfd   :  { %v388_v47 = vadd.f32 %v373_v46, %v372_v44  ;;  %v476_v48 = vpop.f32.mrb[4].mxu0  ;;  %v500_v49 = vpop.f32.mrb[4].mxu1 }
  0xfe   :  { %v477_v50 = vpop.f32.mrb[5].mxu0  ;;  %v501_v51 = vpop.f32.mrb[5].mxu1 }
  0xff   :  { %v478_v52 = vadd.f32 %v477_v50, %v476_v48  ;;  %v479_v53 = vpop.f32.mrb[6].mxu0  ;;  %v708_v54 = vadd.f32 %v501_v51, %v500_v49  ;;  %v503_v55 = vpop.f32.mrb[6].mxu1 }
 0x100   :  { %v480_v56 = vpop.f32.mrb[7].mxu0  ;;  %v504_v57 = vpop.f32.mrb[7].mxu1 }
 0x101   :  { %337 = vst [vmem:[%s761_s2 + $0x10] sm:$0xff] %v478_v52  ;;  %v352_v58 = vadd.f32 %v478_v52, %v351_v45  ;;  %v374_v59 = vmul.f32 %v478_v52, %v478_v52  ;;  %v481_v60 = vadd.f32 %v480_v56, %v479_v53  ;;  %345 = vst [vmem:[%s761_s2 + $0x50] sm:$0xff] %v708_v54 }
 0x102   :  { %v505_v61 = vadd.f32 %v504_v57, %v503_v55  ;;  %v382_v45 = vmul.f32 %v708_v54, %v708_v54 }
 0x103   :  { %v389_v62 = vadd.f32 %v388_v47, %v374_v59  ;;  %338 = vst [vmem:[%s761_s2 + $0x18] sm:$0xff] %v481_v60  ;;  %v353_v63 = vadd.f32 %v481_v60, %v352_v58  ;;  %v375_v0 = vmul.f32 %v481_v60, %v481_v60 }
 0x104   :  { %346 = vst [vmem:[%s761_s2 + $0x58] sm:$0xff] %v505_v61  ;;  %v383_v48 = vmul.f32 %v505_v61, %v505_v61 }
 0x105   :  { %v390_v1 = vadd.f32 %v389_v62, %v375_v0  ;;  %v482_v2 = vpop.f32.mrb[8].mxu0  ;;  %v506_v3 = vpop.f32.mrb[8].mxu1 }
 0x106   :  { %v483_v4 = vpop.f32.mrb[9].mxu0  ;;  %v507_v5 = vpop.f32.mrb[9].mxu1 }
 0x107   :  { %v484_v6 = vadd.f32 %v483_v4, %v482_v2  ;;  %v485_v7 = vpop.f32.mrb[10].mxu0  ;;  %v508_v8 = vadd.f32 %v507_v5, %v506_v3  ;;  %v509_v9 = vpop.f32.mrb[10].mxu1 }
 0x108   :  { %v486_v10 = vpop.f32.mrb[11].mxu0  ;;  %v510_v11 = vpop.f32.mrb[11].mxu1 }
 0x109   :  { %339 = vst [vmem:[%s761_s2 + $0x20] sm:$0xff] %v484_v6  ;;  %v354_v12 = vadd.f32 %v484_v6, %v353_v63  ;;  %v376_v13 = vmul.f32 %v484_v6, %v484_v6  ;;  %v487_v14 = vadd.f32 %v486_v10, %v485_v7  ;;  %347 = vst [vmem:[%s761_s2 + $0x60] sm:$0xff] %v508_v8 }
 0x10a   :  { %v511_v15 = vadd.f32 %v510_v11, %v509_v9  ;;  %v384_v52 = vmul.f32 %v508_v8, %v508_v8 }
 0x10b   :  { %v391_v16 = vadd.f32 %v390_v1, %v376_v13  ;;  %340 = vst [vmem:[%s761_s2 + $0x28] sm:$0xff] %v487_v14  ;;  %v355_v17 = vadd.f32 %v487_v14, %v354_v12  ;;  %v377_v18 = vmul.f32 %v487_v14, %v487_v14 }
 0x10c   :  { %348 = vst [vmem:[%s761_s2 + $0x68] sm:$0xff] %v511_v15  ;;  %v385_v56 = vmul.f32 %v511_v15, %v511_v15 }
 0x10d   :  { %v392_v19 = vadd.f32 %v391_v16, %v377_v18  ;;  %v488_v20 = vpop.f32.mrb[12].mxu0  ;;  %v512_v21 = vpop.f32.mrb[12].mxu1 }
 0x10e   :  { %v489_v22 = vpop.f32.mrb[13].mxu0  ;;  %v513_v23 = vpop.f32.mrb[13].mxu1 }
 0x10f   :  { %v490_v24 = vadd.f32 %v489_v22, %v488_v20  ;;  %v491_v25 = vpop.f32.mrb[14].mxu0  ;;  %v514_v26 = vadd.f32 %v513_v23, %v512_v21  ;;  %v515_v27 = vpop.f32.mrb[14].mxu1 }
 0x110   :  { %v492_v28 = vpop.f32.mrb[15].mxu0  ;;  %v516_v29 = vpop.f32.mrb[15].mxu1 }
 0x111   :  { %341 = vst [vmem:[%s761_s2 + $0x30] sm:$0xff] %v490_v24  ;;  %v356_v30 = vadd.f32 %v490_v24, %v355_v17  ;;  %v378_v31 = vmul.f32 %v490_v24, %v490_v24  ;;  %v493_v32 = vadd.f32 %v492_v28, %v491_v25  ;;  %349 = vst [vmem:[%s761_s2 + $0x70] sm:$0xff] %v514_v26 }
 0x112   :  { %v517_v33 = vadd.f32 %v516_v29, %v515_v27  ;;  %v386_v57 = vmul.f32 %v514_v26, %v514_v26 }
 0x113   :  { %v393_v34 = vadd.f32 %v392_v19, %v378_v31  ;;  %342 = vst [vmem:[%s761_s2 + $0x38] sm:$0xff] %v493_v32  ;;  %v357_v35 = vadd.f32 %v493_v32, %v356_v30  ;;  %v379_v36 = vmul.f32 %v493_v32, %v493_v32 }
 0x114   :  { %350 = vst [vmem:[%s761_s2 + $0x78] sm:$0xff] %v517_v33  ;;  %v387_v62 = vmul.f32 %v517_v33, %v517_v33 }
 0x115   :  { %v358_v39 = vadd.f32 %v690_v38, %v357_v35  ;;  %v394_v40 = vadd.f32 %v393_v34, %v379_v36 }
 0x117   :  { %v359_v42 = vadd.f32 %v699_v43, %v358_v39  ;;  %v395_v44 = vadd.f32 %v394_v40, %v380_v37 }
 0x119   :  { %v396_v46 = vadd.f32 %v395_v44, %v381_v41  ;;  %v360_v47 = vadd.f32 %v708_v54, %v359_v42 }
 0x11b   :  { %v361_v49 = vadd.f32 %v505_v61, %v360_v47  ;;  %v397_v50 = vadd.f32 %v396_v46, %v382_v45 }
 0x11d   :  { %v362_v51 = vadd.f32 %v508_v8, %v361_v49  ;;  %v398_v53 = vadd.f32 %v397_v50, %v383_v48 }
 0x11f   :  { %v399_v38 = vadd.f32 %v398_v53, %v384_v52  ;;  %v363_v55 = vadd.f32 %v511_v15, %v362_v51 }
 0x121   :  { %v400_v58 = vadd.f32 %v399_v38, %v385_v56  ;;  %v364_v59 = vadd.f32 %v514_v26, %v363_v55 }
 0x123   :  { %v401_v43 = vadd.f32 %v400_v58, %v386_v57  ;;  %v365_v60 = vadd.f32 %v517_v33, %v364_v59 }
 0x125   :  { %v366_v63 = vrot.slane %v365_v60, 4  ;;  %v402_v0 = vadd.f32 %v401_v43, %v387_v62 }
 0x127   :  { %v367_v1 = vadd.f32 %v366_v63, %v365_v60  ;;  %v403_v2 = vrot.slane %v402_v0, 4 }
 0x129   :  { %v368_v54 = vrot.slane %v367_v1, 2  ;;  %v404_v3 = vadd.f32 %v403_v2, %v402_v0 }
 0x12b   :  { %v369_v61 = vadd.f32 %v368_v54, %v367_v1  ;;  %v405_v4 = vrot.slane %v404_v3, 2 }
 0x12d   :  { %v370_v5 = vrot.slane %v369_v61, 1  ;;  %v406_v6 = vadd.f32 %v405_v4, %v404_v3 }
 0x12f   :  { %v407_v7 = vrot.slane %v406_v6, 1  ;;  %v371_v8 = vadd.f32 %v370_v5, %v369_v61 }
 0x131   :  { %v408_v9 = vadd.f32 %v407_v7, %v406_v6 }
 0x133   :  { %v410_v10 = vsel %vm409_vm0, %v371_v8, %v408_v9 }
 0x134   :  { %v412_v11 = vsel %vm411_vm1, %v410_v10, 0.0 }
 0x135   :  { %413 = vst [vmem:[%s762_s3] sm:$0xff] %v412_v11 }

// kernel: decoder_forward.6
= control target key start
LH: loop header
LB: loop body
LE: loop exit
PB: predicated region body
PF: predicated region fallthrough
CT: control target
= control target key end

     0   :  { %s391_s0 = inlined_call_operand.vmem [shape: f32[128,128], index: 0, kind: input, shape index: {}]   ;;  %s392_s1 = inlined_call_operand.vmem [shape: f32[1,128], index: 1, kind: input, shape index: {}]   ;;  %s393_s2 = inlined_call_operand.vmem [shape: f32[1,128], index: 2, kind: input, shape index: {}]   ;;  %s394_s3 = inlined_call_operand.vmem [shape: bf16[128,128], index: 3, kind: output, shape index: {}]  }
   0x1   :  { %v14_v0 = vld [vmem:[%s391_s0] sm:$0xff]  ;;  %v15_v1 = vld [vmem:[%s391_s0 + $0x8] sm:$0xff]  ;;  %v16_v6 = vld [vmem:[%s391_s0 + $0x10] sm:$0xff] }
   0x2   :  { %v286_v2 = vld [vmem:[%s392_s1] ss:$0 sm:$0xff]  ;;  %v17_v7 = vld [vmem:[%s391_s0 + $0x18] sm:$0xff]  ;;  %v19_v11 = vld [vmem:[%s391_s0 + $0x28] sm:$0xff] }
   0x3   :  { %v37_v3 = vmul.f32 %v286_v2, %v14_v0  ;;  %v38_v4 = vmul.f32 %v286_v2, %v15_v1  ;;  %v293_v5 = vld [vmem:[%s393_s2] ss:$0 sm:$0xff]  ;;  %v39_v8 = vmul.f32 %v286_v2, %v16_v6  ;;  %v40_v9 = vmul.f32 %v286_v2, %v17_v7  ;;  %v20_v12 = vld [vmem:[%s391_s0 + $0x30] sm:$0xff]  ;;  %v21_v17 = vld [vmem:[%s391_s0 + $0x38] sm:$0xff] }
   0x4   :  { %v18_v10 = vld [vmem:[%s391_s0 + $0x20] sm:$0xff]  ;;  %v42_v16 = vmul.f32 %v286_v2, %v19_v11  ;;  %v43_v20 = vmul.f32 %v286_v2, %v20_v12  ;;  %v44_v21 = vmul.f32 %v286_v2, %v21_v17  ;;  %v23_v27 = vld [vmem:[%s391_s0 + $0x48] sm:$0xff]  ;;  %v24_v32 = vld [vmem:[%s391_s0 + $0x50] sm:$0xff] }
   0x5   :  { %v60_v13 = vadd.f32 %v293_v5, %v37_v3  ;;  %v61_v14 = vadd.f32 %v293_v5, %v38_v4  ;;  %v41_v15 = vmul.f32 %v286_v2, %v18_v10  ;;  %v62_v18 = vadd.f32 %v293_v5, %v39_v8  ;;  %v22_v22 = vld [vmem:[%s391_s0 + $0x40] sm:$0xff]  ;;  %v25_v33 = vld [vmem:[%s391_s0 + $0x58] sm:$0xff]  ;;  %v27_v39 = vld [vmem:[%s391_s0 + $0x68] sm:$0xff] }
   0x6   :  { %v63_v19 = vadd.f32 %v293_v5, %v40_v9  ;;  %v65_v26 = vadd.f32 %v293_v5, %v42_v16  ;;  %v66_v30 = vadd.f32 %v293_v5, %v43_v20  ;;  %v67_v31 = vadd.f32 %v293_v5, %v44_v21  ;;  %v26_v38 = vld [vmem:[%s391_s0 + $0x60] sm:$0xff]  ;;  %v28_v44 = vld [vmem:[%s391_s0 + $0x70] sm:$0xff]  ;;  %v29_v49 = vld [vmem:[%s391_s0 + $0x78] sm:$0xff] }
   0x7   :  { %v76_v23 = vmax.f32 %v60_v13, 0.0  ;;  %v77_v24 = vmax.f32 %v61_v14, 0.0  ;;  %v64_v25 = vadd.f32 %v293_v5, %v41_v15  ;;  %v78_v28 = vmax.f32 %v62_v18, 0.0 }
   0x8   :  { %v79_v29 = vmax.f32 %v63_v19, 0.0  ;;  %v81_v36 = vmax.f32 %v65_v26, 0.0  ;;  %v45_v37 = vmul.f32 %v286_v2, %v22_v22  ;;  %v82_v41 = vmax.f32 %v66_v30, 0.0 }
   0x9   :  { %v213_v34 = vpack.c.bf16 %v77_v24, %v76_v23  ;;  %v80_v35 = vmax.f32 %v64_v25, 0.0  ;;  %v83_v42 = vmax.f32 %v67_v31, 0.0  ;;  %v46_v43 = vmul.f32 %v286_v2, %v23_v27 }
   0xa   :  { %v218_v40 = vpack.c.bf16 %v79_v29, %v78_v28  ;;  %v68_v46 = vadd.f32 %v293_v5, %v45_v37  ;;  %v47_v47 = vmul.f32 %v286_v2, %v24_v32  ;;  %v48_v48 = vmul.f32 %v286_v2, %v25_v33 }
   0xb   :  { %214 = vst [vmem:[%s394_s3] sm:$0xff] %v213_v34   ;;  %v223_v45 = vpack.c.bf16 %v81_v36, %v80_v35  ;;  %v228_v50 = vpack.c.bf16 %v83_v42, %v82_v41  ;;  %v69_v51 = vadd.f32 %v293_v5, %v46_v43  ;;  %v49_v52 = vmul.f32 %v286_v2, %v26_v38 }
   0xc   :  { %250 = vst [vmem:[%s394_s3 + $0x8] sm:$0xff] %v218_v40   ;;  %v50_v53 = vmul.f32 %v286_v2, %v27_v39  ;;  %v84_v54 = vmax.f32 %v68_v46, 0.0  ;;  %v70_v55 = vadd.f32 %v293_v5, %v47_v47  ;;  %v71_v56 = vadd.f32 %v293_v5, %v48_v48 }
   0xd   :  { %251 = vst [vmem:[%s394_s3 + $0x10] sm:$0xff] %v223_v45   ;;  %v51_v57 = vmul.f32 %v286_v2, %v28_v44  ;;  %252 = vst [vmem:[%s394_s3 + $0x18] sm:$0xff] %v228_v50   ;;  %v85_v58 = vmax.f32 %v69_v51, 0.0  ;;  %v72_v59 = vadd.f32 %v293_v5, %v49_v52  ;;  %v52_v61 = vmul.f32 %v286_v2, %v29_v49 }
   0xe   :  { %v73_v60 = vadd.f32 %v293_v5, %v50_v53  ;;  %v86_v62 = vmax.f32 %v70_v55, 0.0  ;;  %v87_v63 = vmax.f32 %v71_v56, 0.0 }
   0xf   :  { %v74_v0 = vadd.f32 %v293_v5, %v51_v57  ;;  %v233_v1 = vpack.c.bf16 %v85_v58, %v84_v54  ;;  %v88_v3 = vmax.f32 %v72_v59, 0.0  ;;  %v75_v6 = vadd.f32 %v293_v5, %v52_v61 }
  0x10   :  { %v89_v4 = vmax.f32 %v73_v60, 0.0  ;;  %v238_v7 = vpack.c.bf16 %v87_v63, %v86_v62 }
  0x11   :  { %v90_v8 = vmax.f32 %v74_v0, 0.0  ;;  %253 = vst [vmem:[%s394_s3 + $0x20] sm:$0xff] %v233_v1   ;;  %v91_v10 = vmax.f32 %v75_v6, 0.0 }
  0x12   :  { %v243_v9 = vpack.c.bf16 %v89_v4, %v88_v3  ;;  %254 = vst [vmem:[%s394_s3 + $0x28] sm:$0xff] %v238_v7  }
  0x13   :  { %v248_v2 = vpack.c.bf16 %v91_v10, %v90_v8 }
  0x14   :  { %255 = vst [vmem:[%s394_s3 + $0x30] sm:$0xff] %v243_v9  }
  0x15   :  { %256 = vst [vmem:[%s394_s3 + $0x38] sm:$0xff] %v248_v2  }

// kernel: tile.38
= control target key start
LH: loop header
LB: loop body
LE: loop exit
PB: predicated region body
PF: predicated region fallthrough
CT: control target
= control target key end

     0   :  { %s22_s0 = inlined_call_operand.vmem [shape: f32[16], index: 0, kind: input, shape index: {}]   ;;  %s23_s1 = inlined_call_operand.vmem [shape: f32[4,16], index: 1, kind: output, shape index: {}]  }
   0x1   :  { %v4_v0 = vld [vmem:[%s22_s0] ss:$0 sm:$0xff] }
   0x2   :  { %5 = vst [vmem:[%s23_s1] sm:$0xf] %v4_v0 }

// kernel: tile.39
= control target key start
LH: loop header
LB: loop body
LE: loop exit
PB: predicated region body
PF: predicated region fallthrough
CT: control target
= control target key end

     0   :  { %vm7_vm0 = vcmask 130048   ;;  %s37_s8 = smov 16   ;;  %s38_s9 = smov 32   ;;  %vm13_vm1 = vcmask 523648   ;;  %vm19_vm2 = vcmask 392448   ;;  %vm25_vm3 = vcmask 261248   ;;  %s55_s0 = inlined_call_operand.vmem [shape: f32[4,16], index: 0, kind: input, shape index: {}]   ;;  %s56_s1 = inlined_call_operand.vmem [shape: f32[1,64], index: 1, kind: output, shape index: {}]  }
   0x1   :  { %v4_v0 = vld [vmem:[%s55_s0] sm:$0xf]  ;;  %s36_s0 = smov 48  }
   0x2   :  { %5 = vst [vmem:[#allocation1] sm:$0xf] %v4_v0 }
   0x9   :  { %v10_v1 = vld [vmem:[#allocation1 + $0x3] sm:$0x1]   ;;  %v22_v2 = vld [vmem:[#allocation1 + $0x1] sm:$0x1]   ;;  %v6_v3 = vld [vmem:[#allocation1] sm:$0x1]  }
   0xa   :  { %11 = vrot.lane.b32.xlu0 %v10_v1, %s36_s0  ;;  %23 = vrot.lane.b32.xlu1 %v22_v2, %s37_s8  ;;  %v16_v4 = vld [vmem:[#allocation1 + $0x2] sm:$0x1]   ;;  %8 = vst.msk [vmem:[#allocation0] sm:$0x1] %vm7_vm0, %v6_v3  }
   0xe   :  { %17 = vrot.lane.b32.xlu0 %v16_v4, %s38_s9 }
  0x7c   :  { %v12_v5 = vpop.permute.xlu0 %11   ;;  %v24_v6 = vpop.permute.xlu1 %23  }
  0x7d   :  { %14 = vst.msk [vmem:[#allocation0] sm:$0x1] %vm13_vm1, %v12_v5  }
  0x80   :  { %v18_v7 = vpop.permute.xlu0 %17  }
  0x81   :  { %20 = vst.msk [vmem:[#allocation0] sm:$0x1] %vm19_vm2, %v18_v7  }
  0x82   :  { %26 = vst.msk [vmem:[#allocation0] sm:$0x1] %vm25_vm3, %v24_v6  }
  0x89   :  { %v30_v8 = vld [vmem:[#allocation0] sm:$0x1] }
  0x8a   :  { %32 = vst [vmem:[%s56_s1] sm:$0x1] %v30_v8 }

// kernel: decoder_forward.7
= control target key start
LH: loop header
LB: loop body
LE: loop exit
PB: predicated region body
PF: predicated region fallthrough
CT: control target
= control target key end

     0   :  { %s1018_s12 = smov 0   ;;  %s1316_s0 = inlined_call_operand.vmem [shape: bf16[512,128], index: 0, kind: input, shape index: {}]   ;;  %s1317_s1 = inlined_call_operand.vmem [shape: bf16[128,64], index: 1, kind: input, shape index: {}]   ;;  %s1318_s2 = inlined_call_operand.vmem [shape: f32[512,64], index: 2, kind: output, shape index: {0}]   ;;  %s1319_s3 = inlined_call_operand.vmem [shape: f32[16,64], index: 3, kind: output, shape index: {1}]  }
   0x1 LB: > { %s1024_s13 = sadd.s32 4294967295, %s996_s12   ;;  %p838_p0 = scmp.ge.s32.totalorder %s996_s12, 1  ;;  %s996_s12 = sphi %s1018_s12, %s14_s12  }
   0x2   : > { %p141_p1 = scmp.lt.s32.totalorder %s996_s12, 3 }
   0x4   : > { %p142_p2 = pnand %p838_p0, %p141_p1 }
   0x5   : > { %v966_v0 = vld [vmem:[%s1317_s1] sm:$0xff] (!%p142_p2)   ;;  %s839_s16 = sshll.u32 (!%p142_p2), %s1024_s13, 5  ;;  %v967_v1 = vld [vmem:[%s1317_s1 + $0x8] sm:$0xff] (!%p142_p2)   ;;  %v968_v2 = vld [vmem:[%s1317_s1 + $0x10] sm:$0xff] (!%p142_p2)   ;;  %vm539_vm0 = vcmask (!%p142_p2), 523264   ;;  %p181_p4 = scmp.lt.s32.totalorder (!%p142_p2), %s1024_s13, 1 }
   0x6   : > { %145 = sbr.rel (%p142_p2) target bundleno = 333 (0x14d), region = 28  ;;  %p170_p3 = scmp.lt.s32.totalorder (!%p142_p2), %s839_s16, 63  ;;  %894 = vmatprep.subr.bf16.mxu0 (!%p142_p2), %v966_v0  ;;  %942 = vmatprep.subr.bf16.mxu1 (!%p142_p2), %v966_v0  ;;  %v969_v3 = vld [vmem:[%s1317_s1 + $0x18] sm:$0xff] (!%p142_p2)   ;;  %v970_v5 = vld [vmem:[%s1317_s1 + $0x20] sm:$0xff] (!%p142_p2)   ;;  %v971_v6 = vld [vmem:[%s1317_s1 + $0x28] sm:$0xff] (!%p142_p2)   ;;  %vm742_vm1 = vcmask (!%p142_p2), 1040384  }
   0x7   : > { %895 = vmatpush3.bf16.msra.mxu0 (!%p142_p2), %v966_v0  ;;  %950 = vmatpush3.bf16.msra.mxu1 (!%p142_p2), %v966_v0  ;;  %v972_v8 = vld [vmem:[%s1317_s1 + $0x30] sm:$0xff] (!%p142_p2)   ;;  %v973_v9 = vld [vmem:[%s1317_s1 + $0x38] sm:$0xff] (!%p142_p2)   ;;  %vm744_vm2 = vcmask (!%p142_p2), 1041408  }
   0x8   : > { %896 = vmatprep.subr.bf16.mxu0 (!%p142_p2), %v967_v1  ;;  %943 = vmatprep.subr.bf16.mxu1 (!%p142_p2), %v967_v1 }
   0xb   : > { %897 = vmatpush3.bf16.msra.mxu0 (!%p142_p2), %v967_v1  ;;  %951 = vmatpush3.bf16.msra.mxu1 (!%p142_p2), %v967_v1 }
   0xc   : > { %898 = vmatprep.subr.bf16.mxu0 (!%p142_p2), %v968_v2  ;;  %944 = vmatprep.subr.bf16.mxu1 (!%p142_p2), %v968_v2 }
   0xd   : > { %s1321_s16 = smov (!%p170_p3, %s839_s16), 63  ;;  %s1323_s13 = smov (!%p181_p4, %s1024_s13), 1 }
   0xe   : > { %s840_s21 = sshll.u32 %s1321_s16, 2  ;;  %s842_s8 = sshll.u32 %s1321_s16, 3 }
   0xf   : > { %s1044_s24 = scalar_lea.vmem %s1316_s0, %s840_s21  ;;  %899 = vmatpush3.bf16.msra.mxu0 %v968_v2  ;;  %952 = vmatpush3.bf16.msra.mxu1 %v968_v2  ;;  %s1081_s11 = scalar_lea.vmem %s1318_s2, %s842_s8 }
  0x10   : > { %v974_v4 = vld [vmem:[%s1044_s24] sm:$0xff]   ;;  %900 = vmatprep.subr.bf16.mxu0 %v969_v3  ;;  %945 = vmatprep.subr.bf16.mxu1 %v969_v3  ;;  %v975_v10 = vld [vmem:[%s1044_s24 + $0x8] sm:$0xff]   ;;  %v976_v12 = vld [vmem:[%s1044_s24 + $0x10] sm:$0xff]   ;;  %s843_s14 = sshll.u32 %s1323_s13, 3 }
  0x11   : > { %910 = vmatprep.mubr.bf16.mxu0 %v974_v4  ;;  %v982_v7 = vld [vmem:[%s1044_s24 + $0x40] sm:$0xff]   ;;  %v983_v11 = vld [vmem:[%s1044_s24 + $0x48] sm:$0xff]   ;;  %v984_v13 = vld [vmem:[%s1044_s24 + $0x50] sm:$0xff]   ;;  %s184_s17 = scalar_lea.vmem %s1319_s3, %s843_s14 }
  0x12   : > { %926 = vmatprep.mubr.bf16.mxu1 %v982_v7  ;;  %v977_v14 = vld [vmem:[%s1044_s24 + $0x18] sm:$0xff]   ;;  %v978_v16 = vld [vmem:[%s1044_s24 + $0x20] sm:$0xff]   ;;  %v979_v18 = vld [vmem:[%s1044_s24 + $0x28] sm:$0xff]  }
  0x13   : > { %901 = vmatpush3.bf16.msra.mxu0 %v969_v3  ;;  %953 = vmatpush3.bf16.msra.mxu1 %v969_v3  ;;  %v985_v15 = vld [vmem:[%s1044_s24 + $0x58] sm:$0xff]   ;;  %v986_v17 = vld [vmem:[%s1044_s24 + $0x60] sm:$0xff]   ;;  %v987_v19 = vld [vmem:[%s1044_s24 + $0x68] sm:$0xff]  }
  0x14   : > { %902 = vmatprep.subr.bf16.mxu0 %v970_v5  ;;  %946 = vmatprep.subr.bf16.mxu1 %v970_v5  ;;  %v980_v20 = vld [vmem:[%s1044_s24 + $0x30] sm:$0xff]   ;;  %v981_v22 = vld [vmem:[%s1044_s24 + $0x38] sm:$0xff]  }
  0x15   : > { %v988_v21 = vld [vmem:[%s1044_s24 + $0x70] sm:$0xff]   ;;  %v989_v23 = vld [vmem:[%s1044_s24 + $0x78] sm:$0xff]  }
  0x17   : > { %903 = vmatpush3.bf16.msra.mxu0 %v970_v5  ;;  %954 = vmatpush3.bf16.msra.mxu1 %v970_v5 }
  0x18   : > { %904 = vmatprep.subr.bf16.mxu0 %v971_v6  ;;  %947 = vmatprep.subr.bf16.mxu1 %v971_v6 }
  0x1b   : > { %905 = vmatpush3.bf16.msra.mxu0 %v971_v6  ;;  %955 = vmatpush3.bf16.msra.mxu1 %v971_v6 }
  0x1c   : > { %906 = vmatprep.subr.bf16.mxu0 %v972_v8  ;;  %948 = vmatprep.subr.bf16.mxu1 %v972_v8 }
  0x1f   : > { %907 = vmatpush3.bf16.msra.mxu0 %v972_v8  ;;  %956 = vmatpush3.bf16.msra.mxu1 %v972_v8 }
  0x20   : > { %908 = vmatprep.subr.bf16.mxu0 %v973_v9  ;;  %949 = vmatprep.subr.bf16.mxu1 %v973_v9 }
  0x23   : > { %909 = vmatpush3.bf16.msra.mxu0 %v973_v9  ;;  %957 = vmatpush3.bf16.msra.mxu1 %v973_v9 }
  0x26   : > { %911 = vmatmul.mubr.bf16.vlgmr.msra.gmra.mrb[0].mxu0 %v975_v10  ;;  %927 = vmatmul.mubr.bf16.vlgmr.msra.gmra.mrb[0].mxu1 %v983_v11 }
  0x27   : > { %914 = vmatprep.mubr.bf16.mxu0 %v976_v12  ;;  %930 = vmatprep.mubr.bf16.mxu1 %v984_v13 }
  0x2e   : > { %915 = vmatmul.mubr.bf16.gmra.mrb[4].mxu0 %v977_v14  ;;  %931 = vmatmul.mubr.bf16.gmra.mrb[4].mxu1 %v985_v15 }
  0x2f   : > { %918 = vmatprep.mubr.bf16.mxu0 %v978_v16  ;;  %934 = vmatprep.mubr.bf16.mxu1 %v986_v17 }
  0x36   : > { %919 = vmatmul.mubr.bf16.gmra.mrb[8].mxu0 %v979_v18  ;;  %935 = vmatmul.mubr.bf16.gmra.mrb[8].mxu1 %v987_v19 }
  0x37   : > { %922 = vmatprep.mubr.bf16.mxu0 %v980_v20  ;;  %938 = vmatprep.mubr.bf16.mxu1 %v988_v21 }
  0x3e   : > { %923 = vmatmul.mubr.bf16.gmra.mrb[12].mxu0 %v981_v22  ;;  %939 = vmatmul.mubr.bf16.gmra.mrb[12].mxu1 %v989_v23 }
  0xf9   : > { %v912_v24 = vpop.f32.mrb[0].mxu0  ;;  %v1083_v25 = vpop.f32.mrb[0].mxu1 }
  0xfa   : > { %542 = vst.msk [vmem:[%s1081_s11 + $0x10] sm:$0xff] %vm539_vm0, %v912_v24  ;;  %v412_v26 = vpop.f32.mrb[1].mxu0  ;;  %558 = vst.msk [vmem:[%s1081_s11 + $0x90] sm:$0xff] %vm539_vm0, %v1083_v25  ;;  %v1090_v27 = vpop.f32.mrb[1].mxu1  ;;  %v643_v33 = vmul.f32 %v912_v24, %v912_v24  ;;  %v575_v38 = vsel %vm539_vm0, %v912_v24, 0.0 }
  0xfb   : > { %540 = vst.msk [vmem:[%s1081_s11] sm:$0xff] %vm539_vm0, %v412_v26  ;;  %v641_v28 = vmul.f32 %v412_v26, %v412_v26  ;;  %v913_v29 = vpop.f32.mrb[2].mxu0  ;;  %556 = vst.msk [vmem:[%s1081_s11 + $0x80] sm:$0xff] %vm539_vm0, %v1090_v27  ;;  %v1097_v30 = vpop.f32.mrb[2].mxu1  ;;  %v572_v34 = vsel %vm539_vm0, %v412_v26, 0.0 }
  0xfc   : > { %543 = vst.msk [vmem:[%s1081_s11 + $0x18] sm:$0xff] %vm539_vm0, %v913_v29  ;;  %v415_v31 = vpop.f32.mrb[3].mxu0  ;;  %559 = vst.msk [vmem:[%s1081_s11 + $0x98] sm:$0xff] %vm539_vm0, %v1097_v30  ;;  %v1104_v32 = vpop.f32.mrb[3].mxu1  ;;  %v644_v40 = vmul.f32 %v913_v29, %v913_v29  ;;  %v676_v44 = vsel %vm539_vm0, %v643_v33, 0.0  ;;  %v577_v45 = vsel %vm539_vm0, %v913_v29, 0.0 }
  0xfd   : > { %541 = vst.msk [vmem:[%s1081_s11 + $0x8] sm:$0xff] %vm539_vm0, %v415_v31  ;;  %v573_v35 = vsel %vm539_vm0, %v415_v31, 0.0  ;;  %v642_v36 = vmul.f32 %v415_v31, %v415_v31  ;;  %557 = vst.msk [vmem:[%s1081_s11 + $0x88] sm:$0xff] %vm539_vm0, %v1104_v32  ;;  %v673_v39 = vsel %vm539_vm0, %v641_v28, 0.0 }
  0xfe   : > { %v574_v37 = vadd.f32 %v573_v35, %v572_v34  ;;  %v678_v52 = vsel %vm539_vm0, %v644_v40, 0.0 }
  0xff   : > { %v674_v41 = vsel %vm539_vm0, %v642_v36, 0.0 }
 0x100   : > { %v576_v42 = vadd.f32 %v575_v38, %v574_v37  ;;  %v675_v43 = vadd.f32 %v674_v41, %v673_v39 }
 0x101   : > { %v916_v46 = vpop.f32.mrb[4].mxu0  ;;  %v1118_v47 = vpop.f32.mrb[4].mxu1 }
 0x102   : > { %v677_v48 = vadd.f32 %v676_v44, %v675_v43  ;;  %546 = vst.msk [vmem:[%s1081_s11 + $0x30] sm:$0xff] %vm539_vm0, %v916_v46  ;;  %v428_v49 = vpop.f32.mrb[5].mxu0  ;;  %v578_v50 = vadd.f32 %v577_v45, %v576_v42  ;;  %562 = vst.msk [vmem:[%s1081_s11 + $0xb0] sm:$0xff] %vm539_vm0, %v1118_v47  ;;  %v1125_v51 = vpop.f32.mrb[5].mxu1  ;;  %v647_v61 = vmul.f32 %v916_v46, %v916_v46  ;;  %v583_v3 = vsel %vm539_vm0, %v916_v46, 0.0 }
 0x103   : > { %544 = vst.msk [vmem:[%s1081_s11 + $0x20] sm:$0xff] %vm539_vm0, %v428_v49  ;;  %v579_v53 = vsel %vm539_vm0, %v428_v49, 0.0  ;;  %v645_v54 = vmul.f32 %v428_v49, %v428_v49  ;;  %v917_v55 = vpop.f32.mrb[6].mxu0  ;;  %560 = vst.msk [vmem:[%s1081_s11 + $0xa0] sm:$0xff] %vm539_vm0, %v1125_v51  ;;  %v1134_v56 = vpop.f32.mrb[6].mxu1 }
 0x104   : > { %v580_v57 = vadd.f32 %v579_v53, %v578_v50  ;;  %v679_v58 = vadd.f32 %v678_v52, %v677_v48  ;;  %547 = vst.msk [vmem:[%s1081_s11 + $0x38] sm:$0xff] %vm539_vm0, %v917_v55  ;;  %v431_v59 = vpop.f32.mrb[7].mxu0  ;;  %563 = vst.msk [vmem:[%s1081_s11 + $0xb8] sm:$0xff] %vm539_vm0, %v1134_v56  ;;  %v1141_v60 = vpop.f32.mrb[7].mxu1  ;;  %v648_v4 = vmul.f32 %v917_v55, %v917_v55  ;;  %v684_v8 = vsel %vm539_vm0, %v647_v61, 0.0 }
 0x105   : > { %v680_v62 = vsel %vm539_vm0, %v645_v54, 0.0  ;;  %545 = vst.msk [vmem:[%s1081_s11 + $0x28] sm:$0xff] %vm539_vm0, %v431_v59  ;;  %v581_v63 = vsel %vm539_vm0, %v431_v59, 0.0  ;;  %v646_v0 = vmul.f32 %v431_v59, %v431_v59  ;;  %561 = vst.msk [vmem:[%s1081_s11 + $0xa8] sm:$0xff] %vm539_vm0, %v1141_v60  ;;  %v585_v9 = vsel %vm539_vm0, %v917_v55, 0.0 }
 0x106   : > { %v681_v1 = vadd.f32 %v680_v62, %v679_v58  ;;  %v582_v2 = vadd.f32 %v581_v63, %v580_v57  ;;  %v686_v16 = vsel %vm539_vm0, %v648_v4, 0.0 }
 0x107   : > { %v682_v5 = vsel %vm539_vm0, %v646_v0, 0.0 }
 0x108   : > { %v584_v6 = vadd.f32 %v583_v3, %v582_v2  ;;  %v683_v7 = vadd.f32 %v682_v5, %v681_v1 }
 0x109   : > { %v920_v10 = vpop.f32.mrb[8].mxu0  ;;  %v1154_v11 = vpop.f32.mrb[8].mxu1 }
 0x10a   : > { %v685_v12 = vadd.f32 %v684_v8, %v683_v7  ;;  %550 = vst.msk [vmem:[%s1081_s11 + $0x50] sm:$0xff] %vm539_vm0, %v920_v10  ;;  %v444_v13 = vpop.f32.mrb[9].mxu0  ;;  %v586_v14 = vadd.f32 %v585_v9, %v584_v6  ;;  %566 = vst.msk [vmem:[%s1081_s11 + $0xd0] sm:$0xff] %vm539_vm0, %v1154_v11  ;;  %v1161_v15 = vpop.f32.mrb[9].mxu1  ;;  %v651_v26 = vmul.f32 %v920_v10, %v920_v10  ;;  %v591_v35 = vsel %vm539_vm0, %v920_v10, 0.0 }
 0x10b   : > { %548 = vst.msk [vmem:[%s1081_s11 + $0x40] sm:$0xff] %vm539_vm0, %v444_v13  ;;  %v587_v17 = vsel %vm539_vm0, %v444_v13, 0.0  ;;  %v649_v18 = vmul.f32 %v444_v13, %v444_v13  ;;  %v921_v19 = vpop.f32.mrb[10].mxu0  ;;  %564 = vst.msk [vmem:[%s1081_s11 + $0xc0] sm:$0xff] %vm539_vm0, %v1161_v15  ;;  %v1170_v20 = vpop.f32.mrb[10].mxu1  ;;  %v657_v6 = vmul.f32 %v1090_v27, %v1090_v27 }
 0x10c   : > { %v588_v21 = vadd.f32 %v587_v17, %v586_v14  ;;  %v687_v22 = vadd.f32 %v686_v16, %v685_v12  ;;  %551 = vst.msk [vmem:[%s1081_s11 + $0x58] sm:$0xff] %vm539_vm0, %v921_v19  ;;  %v447_v23 = vpop.f32.mrb[11].mxu0  ;;  %567 = vst.msk [vmem:[%s1081_s11 + $0xd8] sm:$0xff] %vm539_vm0, %v1170_v20  ;;  %v1177_v24 = vpop.f32.mrb[11].mxu1  ;;  %v652_v36 = vmul.f32 %v921_v19, %v921_v19  ;;  %v692_v40 = vsel %vm539_vm0, %v651_v26, 0.0 }
 0x10d   : > { %v688_v28 = vsel %vm539_vm0, %v649_v18, 0.0  ;;  %549 = vst.msk [vmem:[%s1081_s11 + $0x48] sm:$0xff] %vm539_vm0, %v447_v23  ;;  %v589_v29 = vsel %vm539_vm0, %v447_v23, 0.0  ;;  %v650_v31 = vmul.f32 %v447_v23, %v447_v23  ;;  %565 = vst.msk [vmem:[%s1081_s11 + $0xc8] sm:$0xff] %vm539_vm0, %v1177_v24  ;;  %v593_v41 = vsel %vm539_vm0, %v921_v19, 0.0 }
 0x10e   : > { %v689_v33 = vadd.f32 %v688_v28, %v687_v22  ;;  %v590_v34 = vadd.f32 %v589_v29, %v588_v21  ;;  %v694_v49 = vsel %vm539_vm0, %v652_v36, 0.0  ;;  %v603_v12 = vsel %vm539_vm0, %v1090_v27, 0.0 }
 0x10f   : > { %v690_v37 = vsel %vm539_vm0, %v650_v31, 0.0  ;;  %v704_v17 = vsel %vm539_vm0, %v657_v6, 0.0  ;;  %v658_v18 = vmul.f32 %v1104_v32, %v1104_v32  ;;  %v659_v22 = vmul.f32 %v1083_v25, %v1083_v25 }
 0x110   : > { %v592_v38 = vadd.f32 %v591_v35, %v590_v34  ;;  %v691_v39 = vadd.f32 %v690_v37, %v689_v33  ;;  %v605_v23 = vsel %vm539_vm0, %v1104_v32, 0.0  ;;  %v607_v27 = vsel %vm539_vm0, %v1083_v25, 0.0 }
 0x111   : > { %v924_v42 = vpop.f32.mrb[12].mxu0  ;;  %v1190_v43 = vpop.f32.mrb[12].mxu1  ;;  %v660_v29 = vmul.f32 %v1097_v30, %v1097_v30  ;;  %v706_v31 = vsel %vm539_vm0, %v658_v18, 0.0  ;;  %v661_v33 = vmul.f32 %v1125_v51, %v1125_v51  ;;  %v708_v36 = vsel %vm539_vm0, %v659_v22, 0.0 }
 0x112   : > { %v693_v44 = vadd.f32 %v692_v40, %v691_v39  ;;  %554 = vst.msk [vmem:[%s1081_s11 + $0x70] sm:$0xff] %vm539_vm0, %v924_v42  ;;  %v460_v45 = vpop.f32.mrb[13].mxu0  ;;  %v594_v46 = vadd.f32 %v593_v41, %v592_v38  ;;  %570 = vst.msk [vmem:[%s1081_s11 + $0xf0] sm:$0xff] %vm539_vm0, %v1190_v43  ;;  %v1197_v48 = vpop.f32.mrb[13].mxu1  ;;  %v655_v61 = vmul.f32 %v924_v42, %v924_v42  ;;  %v599_v3 = vsel %vm539_vm0, %v924_v42, 0.0 }
 0x113   : > { %552 = vst.msk [vmem:[%s1081_s11 + $0x60] sm:$0xff] %vm539_vm0, %v460_v45  ;;  %v595_v50 = vsel %vm539_vm0, %v460_v45, 0.0  ;;  %v653_v52 = vmul.f32 %v460_v45, %v460_v45  ;;  %v925_v53 = vpop.f32.mrb[14].mxu0  ;;  %568 = vst.msk [vmem:[%s1081_s11 + $0xe0] sm:$0xff] %vm539_vm0, %v1197_v48  ;;  %v1206_v54 = vpop.f32.mrb[14].mxu1  ;;  %v609_v32 = vsel %vm539_vm0, %v1097_v30, 0.0  ;;  %v662_v41 = vmul.f32 %v1141_v60, %v1141_v60 }
 0x114   : > { %v596_v55 = vadd.f32 %v595_v50, %v594_v46  ;;  %v695_v57 = vadd.f32 %v694_v49, %v693_v44  ;;  %555 = vst.msk [vmem:[%s1081_s11 + $0x78] sm:$0xff] %vm539_vm0, %v925_v53  ;;  %v463_v58 = vpop.f32.mrb[15].mxu0  ;;  %571 = vst.msk [vmem:[%s1081_s11 + $0xf8] sm:$0xff] %vm539_vm0, %v1206_v54  ;;  %v1213_v59 = vpop.f32.mrb[15].mxu1  ;;  %v656_v4 = vmul.f32 %v925_v53, %v925_v53  ;;  %v700_v9 = vsel %vm539_vm0, %v655_v61, 0.0 }
 0x115   : > { %v696_v62 = vsel %vm539_vm0, %v653_v52, 0.0  ;;  %553 = vst.msk [vmem:[%s1081_s11 + $0x68] sm:$0xff] %vm539_vm0, %v463_v58  ;;  %v597_v63 = vsel %vm539_vm0, %v463_v58, 0.0  ;;  %v654_v0 = vmul.f32 %v463_v58, %v463_v58  ;;  %569 = vst.msk [vmem:[%s1081_s11 + $0xe8] sm:$0xff] %vm539_vm0, %v1213_v59  ;;  %v601_v10 = vsel %vm539_vm0, %v925_v53, 0.0 }
 0x116   : > { %v697_v1 = vadd.f32 %v696_v62, %v695_v57  ;;  %v598_v2 = vadd.f32 %v597_v63, %v596_v55  ;;  %v702_v16 = vsel %vm539_vm0, %v656_v4, 0.0  ;;  %v611_v37 = vsel %vm539_vm0, %v1125_v51, 0.0 }
 0x117   : > { %v698_v5 = vsel %vm539_vm0, %v654_v0, 0.0  ;;  %v710_v39 = vsel %vm539_vm0, %v660_v29, 0.0  ;;  %v712_v40 = vsel %vm539_vm0, %v661_v33, 0.0  ;;  %v663_v45 = vmul.f32 %v1118_v47, %v1118_v47 }
 0x118   : > { %v600_v7 = vadd.f32 %v599_v3, %v598_v2  ;;  %v699_v8 = vadd.f32 %v698_v5, %v697_v1  ;;  %v613_v30 = vsel %vm539_vm0, %v1141_v60, 0.0  ;;  %v615_v51 = vsel %vm539_vm0, %v1118_v47, 0.0 }
 0x119   : > { %v664_v50 = vmul.f32 %v1134_v56, %v1134_v56  ;;  %v714_v52 = vsel %vm539_vm0, %v662_v41, 0.0  ;;  %v665_v53 = vmul.f32 %v1161_v15, %v1161_v15  ;;  %v716_v58 = vsel %vm539_vm0, %v663_v45, 0.0 }
 0x11a   : > { %v701_v13 = vadd.f32 %v700_v9, %v699_v8  ;;  %v602_v14 = vadd.f32 %v601_v10, %v600_v7  ;;  %v617_v60 = vsel %vm539_vm0, %v1134_v56, 0.0  ;;  %v619_v61 = vsel %vm539_vm0, %v1161_v15, 0.0 }
 0x11b   : > { %v718_v63 = vsel %vm539_vm0, %v664_v50, 0.0  ;;  %v720_v0 = vsel %vm539_vm0, %v665_v53, 0.0  ;;  %v666_v1 = vmul.f32 %v1177_v24, %v1177_v24  ;;  %v667_v4 = vmul.f32 %v1154_v11, %v1154_v11 }
 0x11c   : > { %v604_v19 = vadd.f32 %v603_v12, %v602_v14  ;;  %v703_v21 = vadd.f32 %v702_v16, %v701_v13  ;;  %v621_v56 = vsel %vm539_vm0, %v1177_v24, 0.0  ;;  %v623_v15 = vsel %vm539_vm0, %v1154_v11, 0.0 }
 0x11d   : > { %v668_v7 = vmul.f32 %v1170_v20, %v1170_v20  ;;  %v722_v8 = vsel %vm539_vm0, %v666_v1, 0.0  ;;  %v669_v9 = vmul.f32 %v1197_v48, %v1197_v48  ;;  %v724_v13 = vsel %vm539_vm0, %v667_v4, 0.0 }
 0x11e   : > { %v705_v26 = vadd.f32 %v704_v17, %v703_v21  ;;  %v606_v28 = vadd.f32 %v605_v23, %v604_v19  ;;  %v625_v24 = vsel %vm539_vm0, %v1170_v20, 0.0  ;;  %v627_v14 = vsel %vm539_vm0, %v1197_v48, 0.0 }
 0x11f   : > { %v726_v17 = vsel %vm539_vm0, %v668_v7, 0.0  ;;  %v728_v18 = vsel %vm539_vm0, %v669_v9, 0.0  ;;  %v670_v19 = vmul.f32 %v1213_v59, %v1213_v59  ;;  %v671_v23 = vmul.f32 %v1190_v43, %v1190_v43 }
 0x120   : > { %v608_v34 = vadd.f32 %v607_v27, %v606_v28  ;;  %v707_v35 = vadd.f32 %v706_v31, %v705_v26  ;;  %v629_v20 = vsel %vm539_vm0, %v1213_v59, 0.0  ;;  %v631_v28 = vsel %vm539_vm0, %v1190_v43, 0.0 }
 0x121   : > { %v672_v27 = vmul.f32 %v1206_v54, %v1206_v54  ;;  %v730_v29 = vsel %vm539_vm0, %v670_v19, 0.0 }
 0x122   : > { %v709_v38 = vadd.f32 %v708_v36, %v707_v35  ;;  %v610_v25 = vadd.f32 %v609_v32, %v608_v34  ;;  %v732_v34 = vsel %vm539_vm0, %v671_v23, 0.0  ;;  %v633_v35 = vsel %vm539_vm0, %v1206_v54, 0.0 }
 0x123   : > { %v734_v32 = vsel %vm539_vm0, %v672_v27, 0.0 }
 0x124   : > { %v612_v42 = vadd.f32 %v611_v37, %v610_v25  ;;  %v711_v44 = vadd.f32 %v710_v39, %v709_v38 }
 0x126   : > { %v713_v46 = vadd.f32 %v712_v40, %v711_v44  ;;  %v614_v49 = vadd.f32 %v613_v30, %v612_v42 }
 0x128   : > { %v616_v55 = vadd.f32 %v615_v51, %v614_v49  ;;  %v715_v57 = vadd.f32 %v714_v52, %v713_v46 }
 0x12a   : > { %v717_v62 = vadd.f32 %v716_v58, %v715_v57  ;;  %v618_v47 = vadd.f32 %v617_v60, %v616_v55 }
 0x12c   : > { %v620_v2 = vadd.f32 %v619_v61, %v618_v47  ;;  %v719_v3 = vadd.f32 %v718_v63, %v717_v62 }
 0x12e   : > { %v721_v5 = vadd.f32 %v720_v0, %v719_v3  ;;  %v622_v6 = vadd.f32 %v621_v56, %v620_v2 }
 0x130   : > { %v624_v10 = vadd.f32 %v623_v15, %v622_v6  ;;  %v723_v12 = vadd.f32 %v722_v8, %v721_v5 }
 0x132   : > { %v725_v16 = vadd.f32 %v724_v13, %v723_v12  ;;  %v626_v11 = vadd.f32 %v625_v24, %v624_v10 }
 0x134   : > { %v628_v21 = vadd.f32 %v627_v14, %v626_v11  ;;  %v727_v22 = vadd.f32 %v726_v17, %v725_v16 }
 0x136   : > { %v729_v26 = vadd.f32 %v728_v18, %v727_v22  ;;  %v630_v48 = vadd.f32 %v629_v20, %v628_v21 }
 0x138   : > { %v632_v31 = vadd.f32 %v631_v28, %v630_v48  ;;  %v731_v33 = vadd.f32 %v730_v29, %v729_v26 }
 0x13a   : > { %v634_v36 = vadd.f32 %v633_v35, %v632_v31  ;;  %v733_v59 = vadd.f32 %v732_v34, %v731_v33 }
 0x13c   : > { %v635_v37 = vrot.slane %v634_v36, 4  ;;  %v735_v38 = vadd.f32 %v734_v32, %v733_v59 }
 0x13e   : > { %v636_v43 = vadd.f32 %v635_v37, %v634_v36  ;;  %v736_v25 = vrot.slane %v735_v38, 4 }
 0x140   : > { %v637_v39 = vrot.slane %v636_v43, 2  ;;  %v737_v40 = vadd.f32 %v736_v25, %v735_v38 }
 0x142   : > { %v638_v41 = vadd.f32 %v637_v39, %v636_v43  ;;  %v738_v42 = vrot.slane %v737_v40, 2 }
 0x144   : > { %v639_v44 = vrot.slane %v638_v41, 1  ;;  %v739_v45 = vadd.f32 %v738_v42, %v737_v40 }
 0x146   : > { %v740_v30 = vrot.slane %v739_v45, 1  ;;  %v640_v54 = vadd.f32 %v639_v44, %v638_v41 }
 0x148   : > { %v741_v46 = vadd.f32 %v740_v30, %v739_v45 }
 0x14a   : > { %v743_v49 = vsel %vm742_vm1, %v640_v54, %v741_v46 }
 0x14b   : > { %v745_v51 = vsel %vm744_vm2, %v743_v49, 0.0 }
 0x14c   : > { %746 = vst.msk [vmem:[%s184_s17] sm:$0xff] %vm539_vm0, %v745_v51 }
 0x14d PF: > { %s14_s12 = sadd.s32 1, %s996_s12  }
 0x14e   : > { %p11_p5 = scmp.ge.s32.totalorder %s14_s12, 4  }
 0x150   :  { %13 = sbr.rel (!%p11_p5) target bundleno = 1 (0x1), region = 70 }

// kernel: decoder_forward.8
= control target key start
LH: loop header
LB: loop body
LE: loop exit
PB: predicated region body
PF: predicated region fallthrough
CT: control target
= control target key end

     0   :  { %s646_s12 = smov 0   ;;  %s841_s0 = inlined_call_operand.vmem [shape: f32[512,64], index: 0, kind: input, shape index: {}]   ;;  %s842_s1 = inlined_call_operand.vmem [shape: f32[1,64], index: 1, kind: input, shape index: {}]   ;;  %s843_s2 = inlined_call_operand.vmem [shape: f32[1,64], index: 2, kind: input, shape index: {}]   ;;  %s844_s3 = inlined_call_operand.vmem [shape: bf16[512,64], index: 3, kind: output, shape index: {}]  }
   0x1 LB: > { %s533_s13 = sadd.s32 4294967295, %s624_s12   ;;  %p537_p0 = scmp.ge.s32.totalorder %s624_s12, 1  ;;  %s624_s12 = sphi %s646_s12, %s13_s12  }
   0x2   : > { %p138_p1 = scmp.lt.s32.totalorder %s624_s12, 3 }
   0x4   : > { %p139_p2 = pnand %p537_p0, %p138_p1 }
   0x5   : > { %s538_s14 = sshll.u32 (!%p139_p2), %s533_s13, 5  ;;  %v660_v0 = vld [vmem:[%s842_s1] ss:$0 sm:$0xff] (!%p139_p2)  ;;  %vm444_vm0 = vcmask (!%p139_p2), 519168  }
   0x6   : > { %142 = sbr.rel (%p139_p2) target bundleno = 56 (0x38), region = 32  ;;  %p163_p3 = scmp.lt.s32.totalorder (!%p139_p2), %s538_s14, 63  ;;  %v670_v1 = vld [vmem:[%s843_s2] ss:$0 sm:$0xff] (!%p139_p2) }
   0xd   : > { %s846_s14 = smov (!%p163_p3, %s538_s14), 63 }
   0xe   : > { %s539_s15 = sshll.u32 %s846_s14, 3  ;;  %s541_s23 = sshll.u32 %s846_s14, 2 }
   0xf   : > { %s665_s20 = scalar_lea.vmem %s841_s0, %s539_s15  ;;  %s699_s26 = scalar_lea.vmem %s844_s3, %s541_s23 }
  0x10   : > { %v174_v2 = vld [vmem:[%s665_s20] sm:$0xff]  ;;  %v175_v3 = vld [vmem:[%s665_s20 + $0x8] sm:$0xff]  ;;  %v176_v4 = vld [vmem:[%s665_s20 + $0x10] sm:$0xff] }
  0x11   : > { %v213_v5 = vmul.f32 %v660_v0, %v174_v2  ;;  %v214_v6 = vmul.f32 %v660_v0, %v175_v3  ;;  %v215_v7 = vmul.f32 %v660_v0, %v176_v4  ;;  %v177_v8 = vld [vmem:[%s665_s20 + $0x18] sm:$0xff]  ;;  %v178_v9 = vld [vmem:[%s665_s20 + $0x20] sm:$0xff]  ;;  %v179_v10 = vld [vmem:[%s665_s20 + $0x28] sm:$0xff] }
  0x12   : > { %v216_v11 = vmul.f32 %v660_v0, %v177_v8  ;;  %v217_v12 = vmul.f32 %v660_v0, %v178_v9  ;;  %v218_v13 = vmul.f32 %v660_v0, %v179_v10  ;;  %v180_v14 = vld [vmem:[%s665_s20 + $0x30] sm:$0xff]  ;;  %v181_v15 = vld [vmem:[%s665_s20 + $0x38] sm:$0xff]  ;;  %v182_v32 = vld [vmem:[%s665_s20 + $0x40] sm:$0xff] }
  0x13   : > { %v252_v16 = vadd.f32 %v670_v1, %v213_v5  ;;  %v253_v17 = vadd.f32 %v670_v1, %v214_v6  ;;  %v254_v18 = vadd.f32 %v670_v1, %v215_v7  ;;  %v219_v19 = vmul.f32 %v660_v0, %v180_v14  ;;  %v183_v33 = vld [vmem:[%s665_s20 + $0x48] sm:$0xff]  ;;  %v184_v34 = vld [vmem:[%s665_s20 + $0x50] sm:$0xff]  ;;  %v185_v39 = vld [vmem:[%s665_s20 + $0x58] sm:$0xff] }
  0x14   : > { %v255_v20 = vadd.f32 %v670_v1, %v216_v11  ;;  %v256_v21 = vadd.f32 %v670_v1, %v217_v12  ;;  %v257_v22 = vadd.f32 %v670_v1, %v218_v13  ;;  %v220_v23 = vmul.f32 %v660_v0, %v181_v15  ;;  %v186_v40 = vld [vmem:[%s665_s20 + $0x60] sm:$0xff]  ;;  %v187_v41 = vld [vmem:[%s665_s20 + $0x68] sm:$0xff]  ;;  %v188_v46 = vld [vmem:[%s665_s20 + $0x70] sm:$0xff] }
  0x15   : > { %v284_v24 = vmax.f32 %v252_v16, 0.0  ;;  %v285_v25 = vmax.f32 %v253_v17, 0.0  ;;  %v286_v26 = vmax.f32 %v254_v18, 0.0  ;;  %v258_v27 = vadd.f32 %v670_v1, %v219_v19  ;;  %v189_v51 = vld [vmem:[%s665_s20 + $0x78] sm:$0xff]  ;;  %v190_v10 = vld [vmem:[%s665_s20 + $0x80] sm:$0xff]  ;;  %v191_v11 = vld [vmem:[%s665_s20 + $0x88] sm:$0xff] }
  0x16   : > { %v287_v28 = vmax.f32 %v255_v20, 0.0  ;;  %v288_v29 = vmax.f32 %v256_v21, 0.0  ;;  %v289_v30 = vmax.f32 %v257_v22, 0.0  ;;  %v259_v31 = vadd.f32 %v670_v1, %v220_v23  ;;  %v192_v12 = vld [vmem:[%s665_s20 + $0x90] sm:$0xff]  ;;  %v193_v17 = vld [vmem:[%s665_s20 + $0x98] sm:$0xff]  ;;  %v194_v18 = vld [vmem:[%s665_s20 + $0xa0] sm:$0xff] }
  0x17   : > { %v578_v35 = vpack.c.bf16 %v284_v24, %v284_v24  ;;  %v579_v36 = vpack.c.bf16 %v285_v25, %v285_v25  ;;  %v580_v37 = vpack.c.bf16 %v286_v26, %v286_v26  ;;  %v290_v38 = vmax.f32 %v258_v27, 0.0  ;;  %v195_v19 = vld [vmem:[%s665_s20 + $0xa8] sm:$0xff]  ;;  %v196_v24 = vld [vmem:[%s665_s20 + $0xb0] sm:$0xff] }
  0x18   : > { %v581_v42 = vpack.c.bf16 %v287_v28, %v287_v28  ;;  %v582_v43 = vpack.c.bf16 %v288_v29, %v288_v29  ;;  %v583_v44 = vpack.c.bf16 %v289_v30, %v289_v30  ;;  %v291_v45 = vmax.f32 %v259_v31, 0.0  ;;  %v197_v29 = vld [vmem:[%s665_s20 + $0xb8] sm:$0xff] }
  0x19   : > { %445 = vst.msk [vmem:[%s699_s26] sm:$0xf] %vm444_vm0, %v578_v35  ;;  %446 = vst.msk [vmem:[%s699_s26 + $0x4] sm:$0xf] %vm444_vm0, %v579_v36  ;;  %v584_v47 = vpack.c.bf16 %v290_v38, %v290_v38  ;;  %v221_v48 = vmul.f32 %v660_v0, %v182_v32  ;;  %v222_v49 = vmul.f32 %v660_v0, %v183_v33 }
  0x1a   : > { %447 = vst.msk [vmem:[%s699_s26 + $0x8] sm:$0xf] %vm444_vm0, %v580_v37  ;;  %v223_v50 = vmul.f32 %v660_v0, %v184_v34  ;;  %448 = vst.msk [vmem:[%s699_s26 + $0xc] sm:$0xf] %vm444_vm0, %v581_v42  ;;  %v585_v52 = vpack.c.bf16 %v291_v45, %v291_v45  ;;  %v224_v53 = vmul.f32 %v660_v0, %v185_v39 }
  0x1b   : > { %449 = vst.msk [vmem:[%s699_s26 + $0x10] sm:$0xf] %vm444_vm0, %v582_v43  ;;  %450 = vst.msk [vmem:[%s699_s26 + $0x14] sm:$0xf] %vm444_vm0, %v583_v44  ;;  %v225_v54 = vmul.f32 %v660_v0, %v186_v40  ;;  %v226_v55 = vmul.f32 %v660_v0, %v187_v41  ;;  %v260_v56 = vadd.f32 %v670_v1, %v221_v48 }
  0x1c   : > { %451 = vst.msk [vmem:[%s699_s26 + $0x18] sm:$0xf] %vm444_vm0, %v584_v47  ;;  %v261_v57 = vadd.f32 %v670_v1, %v222_v49  ;;  %v262_v58 = vadd.f32 %v670_v1, %v223_v50  ;;  %v227_v59 = vmul.f32 %v660_v0, %v188_v46  ;;  %452 = vst.msk [vmem:[%s699_s26 + $0x1c] sm:$0xf] %vm444_vm0, %v585_v52  ;;  %v198_v50 = vld [vmem:[%s665_s20 + $0xc0] sm:$0xff]  ;;  %v200_v52 = vld [vmem:[%s665_s20 + $0xd0] sm:$0xff] }
  0x1d   : > { %v263_v60 = vadd.f32 %v670_v1, %v224_v53  ;;  %v264_v61 = vadd.f32 %v670_v1, %v225_v54  ;;  %v265_v62 = vadd.f32 %v670_v1, %v226_v55  ;;  %v228_v63 = vmul.f32 %v660_v0, %v189_v51  ;;  %v199_v51 = vld [vmem:[%s665_s20 + $0xc8] sm:$0xff] }
  0x1e   : > { %v292_v2 = vmax.f32 %v260_v56, 0.0  ;;  %v293_v3 = vmax.f32 %v261_v57, 0.0  ;;  %v294_v4 = vmax.f32 %v262_v58, 0.0  ;;  %v266_v5 = vadd.f32 %v670_v1, %v227_v59  ;;  %v201_v57 = vld [vmem:[%s665_s20 + $0xd8] sm:$0xff]  ;;  %v202_v58 = vld [vmem:[%s665_s20 + $0xe0] sm:$0xff]  ;;  %v203_v59 = vld [vmem:[%s665_s20 + $0xe8] sm:$0xff] }
  0x1f   : > { %v295_v6 = vmax.f32 %v263_v60, 0.0  ;;  %v296_v7 = vmax.f32 %v264_v61, 0.0  ;;  %v297_v8 = vmax.f32 %v265_v62, 0.0  ;;  %v267_v9 = vadd.f32 %v670_v1, %v228_v63 }
  0x20   : > { %v586_v13 = vpack.c.bf16 %v292_v2, %v292_v2  ;;  %v587_v14 = vpack.c.bf16 %v293_v3, %v293_v3  ;;  %v588_v15 = vpack.c.bf16 %v294_v4, %v294_v4  ;;  %v298_v16 = vmax.f32 %v266_v5, 0.0  ;;  %v204_v2 = vld [vmem:[%s665_s20 + $0xf0] sm:$0xff] }
  0x21   : > { %v589_v20 = vpack.c.bf16 %v295_v6, %v295_v6  ;;  %v590_v21 = vpack.c.bf16 %v296_v7, %v296_v7  ;;  %v591_v22 = vpack.c.bf16 %v297_v8, %v297_v8  ;;  %v299_v23 = vmax.f32 %v267_v9, 0.0  ;;  %v205_v7 = vld [vmem:[%s665_s20 + $0xf8] sm:$0xff] }
  0x22   : > { %453 = vst.msk [vmem:[%s699_s26 + $0x20] sm:$0xf] %vm444_vm0, %v586_v13  ;;  %454 = vst.msk [vmem:[%s699_s26 + $0x24] sm:$0xf] %vm444_vm0, %v587_v14  ;;  %v592_v25 = vpack.c.bf16 %v298_v16, %v298_v16  ;;  %v229_v26 = vmul.f32 %v660_v0, %v190_v10  ;;  %v230_v27 = vmul.f32 %v660_v0, %v191_v11 }
  0x23   : > { %455 = vst.msk [vmem:[%s699_s26 + $0x28] sm:$0xf] %vm444_vm0, %v588_v15  ;;  %v231_v28 = vmul.f32 %v660_v0, %v192_v12  ;;  %456 = vst.msk [vmem:[%s699_s26 + $0x2c] sm:$0xf] %vm444_vm0, %v589_v20  ;;  %v593_v30 = vpack.c.bf16 %v299_v23, %v299_v23  ;;  %v232_v31 = vmul.f32 %v660_v0, %v193_v17 }
  0x24   : > { %457 = vst.msk [vmem:[%s699_s26 + $0x30] sm:$0xf] %vm444_vm0, %v590_v21  ;;  %458 = vst.msk [vmem:[%s699_s26 + $0x34] sm:$0xf] %vm444_vm0, %v591_v22  ;;  %v233_v32 = vmul.f32 %v660_v0, %v194_v18  ;;  %v234_v33 = vmul.f32 %v660_v0, %v195_v19  ;;  %v268_v34 = vadd.f32 %v670_v1, %v229_v26 }
  0x25   : > { %459 = vst.msk [vmem:[%s699_s26 + $0x38] sm:$0xf] %vm444_vm0, %v592_v25  ;;  %v269_v35 = vadd.f32 %v670_v1, %v230_v27  ;;  %v270_v36 = vadd.f32 %v670_v1, %v231_v28  ;;  %v235_v37 = vmul.f32 %v660_v0, %v196_v24  ;;  %460 = vst.msk [vmem:[%s699_s26 + $0x3c] sm:$0xf] %vm444_vm0, %v593_v30 }
  0x26   : > { %v271_v38 = vadd.f32 %v670_v1, %v232_v31  ;;  %v272_v39 = vadd.f32 %v670_v1, %v233_v32  ;;  %v273_v40 = vadd.f32 %v670_v1, %v234_v33  ;;  %v236_v41 = vmul.f32 %v660_v0, %v197_v29 }
  0x27   : > { %v300_v42 = vmax.f32 %v268_v34, 0.0  ;;  %v301_v43 = vmax.f32 %v269_v35, 0.0  ;;  %v302_v44 = vmax.f32 %v270_v36, 0.0  ;;  %v274_v45 = vadd.f32 %v670_v1, %v235_v37 }
  0x28   : > { %v303_v46 = vmax.f32 %v271_v38, 0.0  ;;  %v304_v47 = vmax.f32 %v272_v39, 0.0  ;;  %v305_v48 = vmax.f32 %v273_v40, 0.0  ;;  %v275_v49 = vadd.f32 %v670_v1, %v236_v41 }
  0x29   : > { %v594_v53 = vpack.c.bf16 %v300_v42, %v300_v42  ;;  %v595_v54 = vpack.c.bf16 %v301_v43, %v301_v43  ;;  %v596_v55 = vpack.c.bf16 %v302_v44, %v302_v44  ;;  %v306_v56 = vmax.f32 %v274_v45, 0.0 }
  0x2a   : > { %v597_v60 = vpack.c.bf16 %v303_v46, %v303_v46  ;;  %v598_v61 = vpack.c.bf16 %v304_v47, %v304_v47  ;;  %v599_v62 = vpack.c.bf16 %v305_v48, %v305_v48  ;;  %v307_v63 = vmax.f32 %v275_v49, 0.0 }
  0x2b   : > { %461 = vst.msk [vmem:[%s699_s26 + $0x40] sm:$0xf] %vm444_vm0, %v594_v53  ;;  %462 = vst.msk [vmem:[%s699_s26 + $0x44] sm:$0xf] %vm444_vm0, %v595_v54  ;;  %v600_v3 = vpack.c.bf16 %v306_v56, %v306_v56  ;;  %v237_v4 = vmul.f32 %v660_v0, %v198_v50  ;;  %v238_v5 = vmul.f32 %v660_v0, %v199_v51 }
  0x2c   : > { %463 = vst.msk [vmem:[%s699_s26 + $0x48] sm:$0xf] %vm444_vm0, %v596_v55  ;;  %v239_v6 = vmul.f32 %v660_v0, %v200_v52  ;;  %464 = vst.msk [vmem:[%s699_s26 + $0x4c] sm:$0xf] %vm444_vm0, %v597_v60  ;;  %v601_v8 = vpack.c.bf16 %v307_v63, %v307_v63  ;;  %v240_v9 = vmul.f32 %v660_v0, %v201_v57 }
  0x2d   : > { %465 = vst.msk [vmem:[%s699_s26 + $0x50] sm:$0xf] %vm444_vm0, %v598_v61  ;;  %466 = vst.msk [vmem:[%s699_s26 + $0x54] sm:$0xf] %vm444_vm0, %v599_v62  ;;  %v241_v10 = vmul.f32 %v660_v0, %v202_v58  ;;  %v242_v11 = vmul.f32 %v660_v0, %v203_v59  ;;  %v276_v12 = vadd.f32 %v670_v1, %v237_v4 }
  0x2e   : > { %467 = vst.msk [vmem:[%s699_s26 + $0x58] sm:$0xf] %vm444_vm0, %v600_v3  ;;  %v277_v13 = vadd.f32 %v670_v1, %v238_v5  ;;  %v278_v14 = vadd.f32 %v670_v1, %v239_v6  ;;  %v243_v15 = vmul.f32 %v660_v0, %v204_v2  ;;  %468 = vst.msk [vmem:[%s699_s26 + $0x5c] sm:$0xf] %vm444_vm0, %v601_v8 }
  0x2f   : > { %v279_v16 = vadd.f32 %v670_v1, %v240_v9  ;;  %v280_v17 = vadd.f32 %v670_v1, %v241_v10  ;;  %v281_v18 = vadd.f32 %v670_v1, %v242_v11  ;;  %v244_v19 = vmul.f32 %v660_v0, %v205_v7 }
  0x30   : > { %v308_v20 = vmax.f32 %v276_v12, 0.0  ;;  %v309_v21 = vmax.f32 %v277_v13, 0.0  ;;  %v310_v22 = vmax.f32 %v278_v14, 0.0  ;;  %v282_v23 = vadd.f32 %v670_v1, %v243_v15 }
  0x31   : > { %v311_v24 = vmax.f32 %v279_v16, 0.0  ;;  %v312_v25 = vmax.f32 %v280_v17, 0.0  ;;  %v313_v26 = vmax.f32 %v281_v18, 0.0  ;;  %v283_v27 = vadd.f32 %v670_v1, %v244_v19 }
  0x32   : > { %v602_v28 = vpack.c.bf16 %v308_v20, %v308_v20  ;;  %v603_v29 = vpack.c.bf16 %v309_v21, %v309_v21  ;;  %v604_v0 = vpack.c.bf16 %v310_v22, %v310_v22  ;;  %v314_v30 = vmax.f32 %v282_v23, 0.0 }
  0x33   : > { %v605_v31 = vpack.c.bf16 %v311_v24, %v311_v24  ;;  %v606_v32 = vpack.c.bf16 %v312_v25, %v312_v25  ;;  %v607_v33 = vpack.c.bf16 %v313_v26, %v313_v26  ;;  %v315_v34 = vmax.f32 %v283_v27, 0.0 }
  0x34   : > { %469 = vst.msk [vmem:[%s699_s26 + $0x60] sm:$0xf] %vm444_vm0, %v602_v28  ;;  %470 = vst.msk [vmem:[%s699_s26 + $0x64] sm:$0xf] %vm444_vm0, %v603_v29  ;;  %v608_v35 = vpack.c.bf16 %v314_v30, %v314_v30 }
  0x35   : > { %471 = vst.msk [vmem:[%s699_s26 + $0x68] sm:$0xf] %vm444_vm0, %v604_v0  ;;  %472 = vst.msk [vmem:[%s699_s26 + $0x6c] sm:$0xf] %vm444_vm0, %v605_v31  ;;  %v609_v1 = vpack.c.bf16 %v315_v34, %v315_v34 }
  0x36   : > { %473 = vst.msk [vmem:[%s699_s26 + $0x70] sm:$0xf] %vm444_vm0, %v606_v32  ;;  %474 = vst.msk [vmem:[%s699_s26 + $0x74] sm:$0xf] %vm444_vm0, %v607_v33 }
  0x37   : > { %475 = vst.msk [vmem:[%s699_s26 + $0x78] sm:$0xf] %vm444_vm0, %v608_v35  ;;  %476 = vst.msk [vmem:[%s699_s26 + $0x7c] sm:$0xf] %vm444_vm0, %v609_v1 }
  0x38 PF: > { %s13_s12 = sadd.s32 1, %s624_s12  }
  0x39   : > { %p10_p4 = scmp.ge.s32.totalorder %s13_s12, 4  }
  0x3b   :  { %12 = sbr.rel (!%p10_p4) target bundleno = 1 (0x1), region = 62 }

// kernel: decoder_forward.9
= control target key start
LH: loop header
LB: loop body
LE: loop exit
PB: predicated region body
PF: predicated region fallthrough
CT: control target
= control target key end

     0   :  { %s1149_s12 = smov 0   ;;  %s1346_s0 = inlined_call_operand.vmem [shape: bf16[2048,64], index: 0, kind: input, shape index: {}]   ;;  %s1347_s1 = inlined_call_operand.vmem [shape: bf16[64,4], index: 1, kind: input, shape index: {}]   ;;  %s1348_s2 = inlined_call_operand.vmem [shape: f32[1,4], index: 2, kind: input, shape index: {}]   ;;  %s1349_s3 = inlined_call_operand.vmem [shape: f32[2048,4], index: 3, kind: output, shape index: {}]  }
   0x1 LB: > { %s817_s13 = sadd.s32 4294967295, %s1127_s12   ;;  %p821_p0 = scmp.ge.s32.totalorder %s1127_s12, 1  ;;  %s1127_s12 = sphi %s1149_s12, %s13_s12  }
   0x2   : > { %p138_p1 = scmp.lt.s32.totalorder %s1127_s12, 9 }
   0x4   : > { %p139_p2 = pnand %p821_p0, %p138_p1 }
   0x5   : > { %v973_v0 = vld [vmem:[%s1347_s1] sm:$0xff] (!%p139_p2)   ;;  %s822_s16 = sshll.u32 (!%p139_p2), %s817_s13, 5  ;;  %v974_v1 = vld [vmem:[%s1347_s1 + $0x8] sm:$0xff] (!%p139_p2)   ;;  %v975_v2 = vld [vmem:[%s1347_s1 + $0x10] sm:$0xff] (!%p139_p2)   ;;  %vm326_vm0 = vcmask (!%p139_p2), 523264   ;;  %vm728_vm1 = vcmask (!%p139_p2), 31744  }
   0x6   : > { %142 = sbr.rel (%p139_p2) target bundleno = 322 (0x142), region = 32  ;;  %p163_p3 = scmp.lt.s32.totalorder (!%p139_p2), %s822_s16, 255  ;;  %917 = vmatprep.subr.bf16.mxu0 (!%p139_p2), %v973_v0  ;;  %957 = vmatprep.subr.bf16.mxu1 (!%p139_p2), %v973_v0  ;;  %v976_v3 = vld [vmem:[%s1347_s1 + $0x18] sm:$0xff] (!%p139_p2)   ;;  %v1212_v20 = vld [vmem:[%s1348_s2] ss:$0 sm:$0xff] (!%p139_p2) }
   0x7   : > { %918 = vmatpush3.bf16.msra.mxu0 (!%p139_p2), %v973_v0  ;;  %961 = vmatpush3.bf16.msra.mxu1 (!%p139_p2), %v973_v0 }
   0x8   : > { %919 = vmatprep.subr.bf16.mxu0 (!%p139_p2), %v974_v1  ;;  %958 = vmatprep.subr.bf16.mxu1 (!%p139_p2), %v974_v1 }
   0xb   : > { %920 = vmatpush3.bf16.msra.mxu0 (!%p139_p2), %v974_v1  ;;  %962 = vmatpush3.bf16.msra.mxu1 (!%p139_p2), %v974_v1 }
   0xc   : > { %921 = vmatprep.subr.bf16.mxu0 (!%p139_p2), %v975_v2  ;;  %959 = vmatprep.subr.bf16.mxu1 (!%p139_p2), %v975_v2 }
   0xd   : > { %s1351_s16 = smov (!%p163_p3, %s822_s16), 255 }
   0xe   : > { %s823_s21 = sshll.u32 %s1351_s16, 2  ;;  %s825_s29 = sshll.u32 %s1351_s16, 3 }
   0xf   : > { %s1175_s26 = scalar_lea.vmem %s1346_s0, %s823_s21  ;;  %922 = vmatpush3.bf16.msra.mxu0 %v975_v2  ;;  %963 = vmatpush3.bf16.msra.mxu1 %v975_v2  ;;  %s1242_s5 = scalar_lea.vmem %s1349_s3, %s825_s29 }
  0x10   : > { %v977_v4 = vld [vmem:[%s1175_s26] sm:$0xff]   ;;  %923 = vmatprep.subr.bf16.mxu0 %v976_v3  ;;  %960 = vmatprep.subr.bf16.mxu1 %v976_v3  ;;  %v979_v6 = vld [vmem:[%s1175_s26 + $0x8] sm:$0xff]   ;;  %v981_v8 = vld [vmem:[%s1175_s26 + $0x10] sm:$0xff]  }
  0x11   : > { %v978_v5 = vld [vmem:[%s1175_s26 + $0x40] sm:$0xff]   ;;  %925 = vmatprep.mubr.msk.bf16.mxu0 %vm326_vm0, %v977_v4  ;;  %v980_v7 = vld [vmem:[%s1175_s26 + $0x48] sm:$0xff]   ;;  %v982_v9 = vld [vmem:[%s1175_s26 + $0x50] sm:$0xff]  }
  0x12   : > { %941 = vmatprep.mubr.msk.bf16.mxu1 %vm326_vm0, %v978_v5  ;;  %v983_v10 = vld [vmem:[%s1175_s26 + $0x18] sm:$0xff]   ;;  %v985_v12 = vld [vmem:[%s1175_s26 + $0x20] sm:$0xff]   ;;  %v987_v14 = vld [vmem:[%s1175_s26 + $0x28] sm:$0xff]  }
  0x13   : > { %924 = vmatpush3.bf16.msra.mxu0 %v976_v3  ;;  %964 = vmatpush3.bf16.msra.mxu1 %v976_v3  ;;  %v984_v11 = vld [vmem:[%s1175_s26 + $0x58] sm:$0xff]   ;;  %v986_v13 = vld [vmem:[%s1175_s26 + $0x60] sm:$0xff]   ;;  %v988_v15 = vld [vmem:[%s1175_s26 + $0x68] sm:$0xff]  }
  0x14   : > { %v989_v16 = vld [vmem:[%s1175_s26 + $0x30] sm:$0xff]   ;;  %v991_v18 = vld [vmem:[%s1175_s26 + $0x38] sm:$0xff]  }
  0x15   : > { %v990_v17 = vld [vmem:[%s1175_s26 + $0x70] sm:$0xff]   ;;  %v992_v19 = vld [vmem:[%s1175_s26 + $0x78] sm:$0xff]  }
  0x16   : > { %926 = vmatmul.mubr.msk.bf16.vlgmr.msra.gmra.mrb[0].mxu0 %vm326_vm0, %v979_v6  ;;  %942 = vmatmul.mubr.msk.bf16.vlgmr.msra.gmra.mrb[0].mxu1 %vm326_vm0, %v980_v7 }
  0x17   : > { %929 = vmatprep.mubr.msk.bf16.mxu0 %vm326_vm0, %v981_v8  ;;  %945 = vmatprep.mubr.msk.bf16.mxu1 %vm326_vm0, %v982_v9 }
  0x1e   : > { %930 = vmatmul.mubr.msk.bf16.gmra.mrb[4].mxu0 %vm326_vm0, %v983_v10  ;;  %946 = vmatmul.mubr.msk.bf16.gmra.mrb[4].mxu1 %vm326_vm0, %v984_v11 }
  0x1f   : > { %933 = vmatprep.mubr.msk.bf16.mxu0 %vm326_vm0, %v985_v12  ;;  %949 = vmatprep.mubr.msk.bf16.mxu1 %vm326_vm0, %v986_v13 }
  0x26   : > { %934 = vmatmul.mubr.msk.bf16.gmra.mrb[8].mxu0 %vm326_vm0, %v987_v14  ;;  %950 = vmatmul.mubr.msk.bf16.gmra.mrb[8].mxu1 %vm326_vm0, %v988_v15 }
  0x27   : > { %937 = vmatprep.mubr.msk.bf16.mxu0 %vm326_vm0, %v989_v16  ;;  %953 = vmatprep.mubr.msk.bf16.mxu1 %vm326_vm0, %v990_v17 }
  0x2e   : > { %938 = vmatmul.mubr.msk.bf16.gmra.mrb[12].mxu0 %vm326_vm0, %v991_v18  ;;  %954 = vmatmul.mubr.msk.bf16.gmra.mrb[12].mxu1 %vm326_vm0, %v992_v19 }
  0xe9   : > { %v927_v21 = vpop.f32.mrb[0].mxu0  ;;  %v943_v22 = vpop.f32.mrb[0].mxu1 }
  0xea   : > { %v418_v23 = vadd.f32 %v927_v21, %v1212_v20  ;;  %v482_v24 = vadd.f32 %v943_v22, %v1212_v20  ;;  %v409_v25 = vpop.f32.mrb[1].mxu0  ;;  %v473_v26 = vpop.f32.mrb[1].mxu1 }
  0xeb   : > { %v410_v27 = vadd.f32 %v1212_v20, %v409_v25  ;;  %v474_v28 = vadd.f32 %v1212_v20, %v473_v26  ;;  %v928_v29 = vpop.f32.mrb[2].mxu0  ;;  %v944_v30 = vpop.f32.mrb[2].mxu1 }
  0xec   : > { %v865_v31 = vmul.f32 -1.442695, %v418_v23  ;;  %v881_v32 = vmul.f32 -1.442695, %v482_v24  ;;  %v421_v33 = vadd.f32 %v928_v29, %v1212_v20  ;;  %v485_v34 = vadd.f32 %v944_v30, %v1212_v20  ;;  %v412_v35 = vpop.f32.mrb[3].mxu0  ;;  %v476_v36 = vpop.f32.mrb[3].mxu1 }
  0xed   : > { %v863_v37 = vmul.f32 -1.442695, %v410_v27  ;;  %v879_v38 = vmul.f32 -1.442695, %v474_v28  ;;  %v413_v39 = vadd.f32 %v1212_v20, %v412_v35  ;;  %v477_v40 = vadd.f32 %v1212_v20, %v476_v36 }
  0xee   : > { %993 = vpow2.f32 %v865_v31  ;;  %v866_v41 = vmul.f32 -1.442695, %v421_v33  ;;  %v882_v42 = vmul.f32 -1.442695, %v485_v34 }
  0xef   : > { %995 = vpow2.f32 %v881_v32  ;;  %v864_v43 = vmul.f32 -1.442695, %v413_v39  ;;  %v880_v44 = vmul.f32 -1.442695, %v477_v40 }
  0xf0   : > { %997 = vpow2.f32 %v863_v37 }
  0xf1   : > { %999 = vpow2.f32 %v879_v38  ;;  %v931_v45 = vpop.f32.mrb[4].mxu0  ;;  %v947_v46 = vpop.f32.mrb[4].mxu1 }
  0xf2   : > { %1001 = vpow2.f32 %v866_v41  ;;  %v434_v47 = vadd.f32 %v931_v45, %v1212_v20  ;;  %v498_v48 = vadd.f32 %v947_v46, %v1212_v20  ;;  %v425_v49 = vpop.f32.mrb[5].mxu0  ;;  %v489_v50 = vpop.f32.mrb[5].mxu1 }
  0xf3   : > { %1003 = vpow2.f32 %v882_v42  ;;  %v426_v51 = vadd.f32 %v1212_v20, %v425_v49  ;;  %v490_v52 = vadd.f32 %v1212_v20, %v489_v50  ;;  %v932_v53 = vpop.f32.mrb[6].mxu0  ;;  %v948_v54 = vpop.f32.mrb[6].mxu1 }
  0xf4   : > { %1005 = vpow2.f32 %v864_v43  ;;  %v869_v55 = vmul.f32 -1.442695, %v434_v47  ;;  %v885_v56 = vmul.f32 -1.442695, %v498_v48  ;;  %v437_v57 = vadd.f32 %v932_v53, %v1212_v20  ;;  %v428_v58 = vpop.f32.mrb[7].mxu0  ;;  %v492_v59 = vpop.f32.mrb[7].mxu1 }
  0xf5   : > { %1007 = vpow2.f32 %v880_v44  ;;  %v867_v60 = vmul.f32 -1.442695, %v426_v51  ;;  %v883_v61 = vmul.f32 -1.442695, %v490_v52  ;;  %v501_v25 = vadd.f32 %v948_v54, %v1212_v20 }
  0xf6   : > { %1009 = vpow2.f32 %v869_v55  ;;  %v870_v62 = vmul.f32 -1.442695, %v437_v57  ;;  %v429_v28 = vadd.f32 %v1212_v20, %v428_v58  ;;  %v493_v32 = vadd.f32 %v1212_v20, %v492_v59 }
  0xf7   : > { %1011 = vpow2.f32 %v885_v56  ;;  %v886_v42 = vmul.f32 -1.442695, %v501_v25 }
  0xf8   : > { %v994_v63 = vpop.eup %993  ;;  %1013 = vpow2.f32 %v867_v60  ;;  %v868_v48 = vmul.f32 -1.442695, %v429_v28  ;;  %v884_v52 = vmul.f32 -1.442695, %v493_v32 }
  0xf9   : > { %v996_v0 = vpop.eup %995  ;;  %v634_v1 = vadd.f32 1.0, %v994_v63  ;;  %1015 = vpow2.f32 %v883_v61  ;;  %v935_v2 = vpop.f32.mrb[8].mxu0 }
  0xfa   : > { %v951_v3 = vpop.f32.mrb[8].mxu1  ;;  %v998_v4 = vpop.eup %997  ;;  %v650_v5 = vadd.f32 1.0, %v996_v0  ;;  %1017 = vpow2.f32 %v870_v62  ;;  %v450_v37 = vadd.f32 %v935_v2, %v1212_v20 }
  0xfb   : > { %v441_v6 = vpop.f32.mrb[9].mxu0  ;;  %v505_v7 = vpop.f32.mrb[9].mxu1  ;;  %1019 = vrcp.f32 %v634_v1  ;;  %v632_v9 = vadd.f32 1.0, %v998_v4  ;;  %v514_v43 = vadd.f32 %v951_v3, %v1212_v20 }
  0xfc   : > { %v1000_v8 = vpop.eup %999  ;;  %v936_v10 = vpop.f32.mrb[10].mxu0  ;;  %1021 = vrcp.f32 %v650_v5  ;;  %v442_v49 = vadd.f32 %v1212_v20, %v441_v6  ;;  %v506_v53 = vadd.f32 %v1212_v20, %v505_v7  ;;  %v873_v55 = vmul.f32 -1.442695, %v450_v37 }
  0xfd   : > { %v1227_v11 = vpop.f32.mrb[10].mxu1  ;;  %v1002_v12 = vpop.eup %1001  ;;  %v648_v13 = vadd.f32 1.0, %v1000_v8  ;;  %1023 = vrcp.f32 %v632_v9  ;;  %v453_v56 = vadd.f32 %v936_v10, %v1212_v20  ;;  %v889_v58 = vmul.f32 -1.442695, %v514_v43 }
  0xfe   : > { %v1229_v14 = vpop.f32.mrb[11].mxu0  ;;  %v1004_v15 = vpop.eup %1003  ;;  %v635_v16 = vadd.f32 1.0, %v1002_v12  ;;  %v517_v59 = vadd.f32 %v1227_v11, %v1212_v20  ;;  %v871_v61 = vmul.f32 -1.442695, %v442_v49  ;;  %v887_v0 = vmul.f32 -1.442695, %v506_v53 }
  0xff   : > { %v1231_v17 = vpop.f32.mrb[11].mxu1  ;;  %v1006_v18 = vpop.eup %1005  ;;  %1025 = vrcp.f32 %v648_v13  ;;  %v651_v19 = vadd.f32 1.0, %v1004_v15  ;;  %v445_v62 = vadd.f32 %v1212_v20, %v1229_v14  ;;  %v874_v3 = vmul.f32 -1.442695, %v453_v56 }
 0x100   : > { %v1008_v21 = vpop.eup %1007  ;;  %1027 = vrcp.f32 %v635_v16  ;;  %v633_v22 = vadd.f32 1.0, %v1006_v18  ;;  %v509_v1 = vadd.f32 %v1212_v20, %v1231_v17  ;;  %v890_v6 = vmul.f32 -1.442695, %v517_v59 }
 0x101   : > { %v1010_v23 = vpop.eup %1009  ;;  %1029 = vrcp.f32 %v651_v19  ;;  %v649_v24 = vadd.f32 1.0, %v1008_v21  ;;  %v939_v29 = vpop.f32.mrb[12].mxu0  ;;  %v872_v9 = vmul.f32 -1.442695, %v445_v62 }
 0x102   : > { %v1012_v26 = vpop.eup %1011  ;;  %1031 = vrcp.f32 %v633_v22  ;;  %v638_v27 = vadd.f32 1.0, %v1010_v23  ;;  %v955_v33 = vpop.f32.mrb[12].mxu1  ;;  %v466_v4 = vadd.f32 %v939_v29, %v1212_v20  ;;  %v888_v11 = vmul.f32 -1.442695, %v509_v1 }
 0x103   : > { %v1014_v30 = vpop.eup %1013  ;;  %1033 = vrcp.f32 %v649_v24  ;;  %v654_v31 = vadd.f32 1.0, %v1012_v26  ;;  %v1237_v34 = vpop.f32.mrb[13].mxu0  ;;  %v530_v7 = vadd.f32 %v955_v33, %v1212_v20 }
 0x104   : > { %v1016_v35 = vpop.eup %1015  ;;  %1035 = vrcp.f32 %v638_v27  ;;  %v636_v36 = vadd.f32 1.0, %v1014_v30  ;;  %v1245_v38 = vpop.f32.mrb[13].mxu1  ;;  %v877_v13 = vmul.f32 -1.442695, %v466_v4 }
 0x105   : > { %v1247_v39 = vpop.f32.mrb[14].mxu0  ;;  %v1018_v40 = vpop.eup %1017  ;;  %1037 = vrcp.f32 %v654_v31  ;;  %v652_v41 = vadd.f32 1.0, %v1016_v35  ;;  %v893_v15 = vmul.f32 -1.442695, %v530_v7 }
 0x106   : > { %v1250_v44 = vpop.f32.mrb[14].mxu1  ;;  %v1252_v45 = vpop.f32.mrb[15].mxu0  ;;  %1039 = vrcp.f32 %v636_v36  ;;  %v639_v47 = vadd.f32 1.0, %v1018_v40  ;;  %v458_v36 = vadd.f32 %v1212_v20, %v1237_v34 }
 0x107   : > { %v1020_v46 = vpop.eup %1019  ;;  %v1255_v50 = vpop.f32.mrb[15].mxu1  ;;  %1041 = vrcp.f32 %v652_v41  ;;  %v522_v41 = vadd.f32 %v1212_v20, %v1245_v38  ;;  %v533_v49 = vadd.f32 %v1250_v44, %v1212_v20  ;;  %v461_v38 = vadd.f32 %v1212_v20, %v1252_v45 }
 0x108   : > { %v1022_v51 = vpop.eup %1021  ;;  %731 = vst.msk [vmem:[%s1242_s5 + $0x10] sm:$0xff] %vm728_vm1, %v1020_v46  ;;  %1043 = vrcp.f32 %v639_v47  ;;  %v469_v46 = vadd.f32 %v1247_v39, %v1212_v20 }
 0x109   : > { %v1024_v54 = vpop.eup %1023  ;;  %747 = vst.msk [vmem:[%s1242_s5 + $0x90] sm:$0xff] %vm728_vm1, %v1022_v51  ;;  %1045 = vpow2.f32 %v886_v42  ;;  %v891_v39 = vmul.f32 -1.442695, %v522_v41  ;;  %v894_v45 = vmul.f32 -1.442695, %v533_v49 }
 0x10a   : > { %v1026_v57 = vpop.eup %1025  ;;  %729 = vst.msk [vmem:[%s1242_s5] sm:$0xff] %vm728_vm1, %v1024_v54  ;;  %1047 = vpow2.f32 %v868_v48  ;;  %v878_v44 = vmul.f32 -1.442695, %v469_v46  ;;  %v876_v59 = vmul.f32 -1.442695, %v461_v38 }
 0x10b   : > { %v1028_v60 = vpop.eup %1027  ;;  %745 = vst.msk [vmem:[%s1242_s5 + $0x80] sm:$0xff] %vm728_vm1, %v1026_v57  ;;  %1049 = vpow2.f32 %v884_v52  ;;  %v875_v52 = vmul.f32 -1.442695, %v458_v36 }
 0x10c   : > { %v1030_v63 = vpop.eup %1029  ;;  %732 = vst.msk [vmem:[%s1242_s5 + $0x18] sm:$0xff] %vm728_vm1, %v1028_v60  ;;  %1051 = vpow2.f32 %v873_v55  ;;  %v525_v55 = vadd.f32 %v1212_v20, %v1255_v50 }
 0x10d   : > { %v1032_v2 = vpop.eup %1031  ;;  %748 = vst.msk [vmem:[%s1242_s5 + $0x98] sm:$0xff] %vm728_vm1, %v1030_v63  ;;  %1053 = vpow2.f32 %v889_v58 }
 0x10e   : > { %v1034_v5 = vpop.eup %1033  ;;  %730 = vst.msk [vmem:[%s1242_s5 + $0x8] sm:$0xff] %vm728_vm1, %v1032_v2  ;;  %1055 = vpow2.f32 %v871_v61  ;;  %v892_v50 = vmul.f32 -1.442695, %v525_v55 }
 0x10f   : > { %v1036_v8 = vpop.eup %1035  ;;  %746 = vst.msk [vmem:[%s1242_s5 + $0x88] sm:$0xff] %vm728_vm1, %v1034_v5  ;;  %1057 = vpow2.f32 %v887_v0 }
 0x110   : > { %v1038_v10 = vpop.eup %1037  ;;  %735 = vst.msk [vmem:[%s1242_s5 + $0x30] sm:$0xff] %vm728_vm1, %v1036_v8  ;;  %1059 = vpow2.f32 %v874_v3 }
 0x111   : > { %v1040_v12 = vpop.eup %1039  ;;  %751 = vst.msk [vmem:[%s1242_s5 + $0xb0] sm:$0xff] %vm728_vm1, %v1038_v10  ;;  %1061 = vpow2.f32 %v890_v6 }
 0x112   : > { %v1042_v14 = vpop.eup %1041  ;;  %733 = vst.msk [vmem:[%s1242_s5 + $0x20] sm:$0xff] %vm728_vm1, %v1040_v12  ;;  %1063 = vpow2.f32 %v872_v9 }
 0x113   : > { %v1044_v16 = vpop.eup %1043  ;;  %749 = vst.msk [vmem:[%s1242_s5 + $0xa0] sm:$0xff] %vm728_vm1, %v1042_v14  ;;  %1065 = vpow2.f32 %v888_v11 }
 0x114   : > { %v1046_v17 = vpop.eup %1045  ;;  %736 = vst.msk [vmem:[%s1242_s5 + $0x38] sm:$0xff] %vm728_vm1, %v1044_v16  ;;  %1067 = vpow2.f32 %v877_v13 }
 0x115   : > { %v1048_v18 = vpop.eup %1047  ;;  %v655_v19 = vadd.f32 1.0, %v1046_v17  ;;  %1069 = vpow2.f32 %v893_v15 }
 0x116   : > { %v1050_v21 = vpop.eup %1049  ;;  %v637_v22 = vadd.f32 1.0, %v1048_v18 }
 0x117   : > { %v1052_v23 = vpop.eup %1051  ;;  %1071 = vrcp.f32 %v655_v19  ;;  %v653_v24 = vadd.f32 1.0, %v1050_v21 }
 0x118   : > { %v1054_v25 = vpop.eup %1053  ;;  %1073 = vrcp.f32 %v637_v22  ;;  %v642_v26 = vadd.f32 1.0, %v1052_v23 }
 0x119   : > { %v1056_v27 = vpop.eup %1055  ;;  %1075 = vrcp.f32 %v653_v24  ;;  %v658_v28 = vadd.f32 1.0, %v1054_v25 }
 0x11a   : > { %v1058_v29 = vpop.eup %1057  ;;  %1077 = vrcp.f32 %v642_v26  ;;  %v640_v30 = vadd.f32 1.0, %v1056_v27 }
 0x11b   : > { %v1060_v31 = vpop.eup %1059  ;;  %1079 = vrcp.f32 %v658_v28  ;;  %v656_v32 = vadd.f32 1.0, %v1058_v29 }
 0x11c   : > { %v1062_v33 = vpop.eup %1061  ;;  %1081 = vrcp.f32 %v640_v30  ;;  %v643_v35 = vadd.f32 1.0, %v1060_v31 }
 0x11d   : > { %v1064_v37 = vpop.eup %1063  ;;  %1083 = vrcp.f32 %v656_v32  ;;  %v659_v40 = vadd.f32 1.0, %v1062_v33 }
 0x11e   : > { %v1066_v42 = vpop.eup %1065  ;;  %1085 = vrcp.f32 %v643_v35  ;;  %v641_v43 = vadd.f32 1.0, %v1064_v37 }
 0x11f   : > { %v1068_v47 = vpop.eup %1067  ;;  %1087 = vrcp.f32 %v659_v40  ;;  %v657_v48 = vadd.f32 1.0, %v1066_v42 }
 0x120   : > { %v1070_v34 = vpop.eup %1069  ;;  %1089 = vrcp.f32 %v641_v43  ;;  %v646_v51 = vadd.f32 1.0, %v1068_v47 }
 0x121   : > { %v1072_v53 = vpop.eup %1071  ;;  %1091 = vrcp.f32 %v657_v48  ;;  %v662_v54 = vadd.f32 1.0, %v1070_v34 }
 0x122   : > { %v1074_v56 = vpop.eup %1073  ;;  %752 = vst.msk [vmem:[%s1242_s5 + $0xb8] sm:$0xff] %vm728_vm1, %v1072_v53  ;;  %1093 = vrcp.f32 %v646_v51 }
 0x123   : > { %v1076_v57 = vpop.eup %1075  ;;  %734 = vst.msk [vmem:[%s1242_s5 + $0x28] sm:$0xff] %vm728_vm1, %v1074_v56  ;;  %1095 = vrcp.f32 %v662_v54 }
 0x124   : > { %v1078_v58 = vpop.eup %1077  ;;  %750 = vst.msk [vmem:[%s1242_s5 + $0xa8] sm:$0xff] %vm728_vm1, %v1076_v57  ;;  %1097 = vpow2.f32 %v875_v52 }
 0x125   : > { %v1080_v20 = vpop.eup %1079  ;;  %739 = vst.msk [vmem:[%s1242_s5 + $0x50] sm:$0xff] %vm728_vm1, %v1078_v58  ;;  %1099 = vpow2.f32 %v891_v39 }
 0x126   : > { %v1082_v60 = vpop.eup %1081  ;;  %755 = vst.msk [vmem:[%s1242_s5 + $0xd0] sm:$0xff] %vm728_vm1, %v1080_v20  ;;  %1101 = vpow2.f32 %v878_v44 }
 0x127   : > { %v1084_v61 = vpop.eup %1083  ;;  %737 = vst.msk [vmem:[%s1242_s5 + $0x40] sm:$0xff] %vm728_vm1, %v1082_v60  ;;  %1103 = vpow2.f32 %v894_v45 }
 0x128   : > { %v1086_v62 = vpop.eup %1085  ;;  %753 = vst.msk [vmem:[%s1242_s5 + $0xc0] sm:$0xff] %vm728_vm1, %v1084_v61  ;;  %1105 = vpow2.f32 %v876_v59 }
 0x129   : > { %v1088_v63 = vpop.eup %1087  ;;  %740 = vst.msk [vmem:[%s1242_s5 + $0x58] sm:$0xff] %vm728_vm1, %v1086_v62  ;;  %1107 = vpow2.f32 %v892_v50 }
 0x12a   : > { %v1090_v0 = vpop.eup %1089  ;;  %756 = vst.msk [vmem:[%s1242_s5 + $0xd8] sm:$0xff] %vm728_vm1, %v1088_v63 }
 0x12b   : > { %v1092_v1 = vpop.eup %1091  ;;  %738 = vst.msk [vmem:[%s1242_s5 + $0x48] sm:$0xff] %vm728_vm1, %v1090_v0 }
 0x12c   : > { %v1094_v2 = vpop.eup %1093  ;;  %754 = vst.msk [vmem:[%s1242_s5 + $0xc8] sm:$0xff] %vm728_vm1, %v1092_v1 }
 0x12d   : > { %v1096_v3 = vpop.eup %1095  ;;  %743 = vst.msk [vmem:[%s1242_s5 + $0x70] sm:$0xff] %vm728_vm1, %v1094_v2 }
 0x12e   : > { %v1098_v4 = vpop.eup %1097  ;;  %759 = vst.msk [vmem:[%s1242_s5 + $0xf0] sm:$0xff] %vm728_vm1, %v1096_v3 }
 0x12f   : > { %v1100_v5 = vpop.eup %1099  ;;  %v644_v6 = vadd.f32 1.0, %v1098_v4 }
 0x130   : > { %v1102_v7 = vpop.eup %1101  ;;  %v660_v8 = vadd.f32 1.0, %v1100_v5 }
 0x131   : > { %v1104_v9 = vpop.eup %1103  ;;  %1109 = vrcp.f32 %v644_v6  ;;  %v647_v10 = vadd.f32 1.0, %v1102_v7 }
 0x132   : > { %v1106_v11 = vpop.eup %1105  ;;  %1111 = vrcp.f32 %v660_v8  ;;  %v663_v12 = vadd.f32 1.0, %v1104_v9 }
 0x133   : > { %v1108_v13 = vpop.eup %1107  ;;  %1113 = vrcp.f32 %v647_v10  ;;  %v645_v14 = vadd.f32 1.0, %v1106_v11 }
 0x134   : > { %1115 = vrcp.f32 %v663_v12  ;;  %v661_v15 = vadd.f32 1.0, %v1108_v13 }
 0x135   : > { %1117 = vrcp.f32 %v645_v14 }
 0x136   : > { %1119 = vrcp.f32 %v661_v15 }
 0x13b   : > { %v1110_v16 = vpop.eup %1109 }
 0x13c   : > { %v1112_v17 = vpop.eup %1111  ;;  %741 = vst.msk [vmem:[%s1242_s5 + $0x60] sm:$0xff] %vm728_vm1, %v1110_v16 }
 0x13d   : > { %v1114_v18 = vpop.eup %1113  ;;  %757 = vst.msk [vmem:[%s1242_s5 + $0xe0] sm:$0xff] %vm728_vm1, %v1112_v17 }
 0x13e   : > { %v1116_v19 = vpop.eup %1115  ;;  %744 = vst.msk [vmem:[%s1242_s5 + $0x78] sm:$0xff] %vm728_vm1, %v1114_v18 }
 0x13f   : > { %v1118_v21 = vpop.eup %1117  ;;  %760 = vst.msk [vmem:[%s1242_s5 + $0xf8] sm:$0xff] %vm728_vm1, %v1116_v19 }
 0x140   : > { %v1120_v22 = vpop.eup %1119  ;;  %742 = vst.msk [vmem:[%s1242_s5 + $0x68] sm:$0xff] %vm728_vm1, %v1118_v21 }
 0x141   : > { %758 = vst.msk [vmem:[%s1242_s5 + $0xe8] sm:$0xff] %vm728_vm1, %v1120_v22 }
 0x142 PF: > { %s13_s12 = sadd.s32 1, %s1127_s12  }
 0x143   : > { %p10_p4 = scmp.ge.s32.totalorder %s13_s12, 10  }
 0x145   :  { %12 = sbr.rel (!%p10_p4) target bundleno = 1 (0x1), region = 62 }

</bundles_post_ra>
